<compile_context>
chip_gen: v5e
topology: v5e:2x2
jax: 0.10.0
libtpu: 0.0.40
codegen_flags: <defaults>
</compile_context>

<pallas_src>
import jax
import jax.numpy as jnp
from jax.experimental import pallas as pl
from jax.experimental.pallas import tpu as pltpu


def _round_up(x, m):
    return (x + m - 1) // m * m


def _default_bf16_epilogue():
    """bf16 VALU exists on v6e/v7x; v5e would emulate bf16 elementwise ops."""
    try:
        kind = jax.devices()[0].device_kind.lower()
        return "v5" not in kind
    except Exception:  # pragma: no cover - conservative fallback
        return True


def _make_encoder_kernel(bf16_epilogue):
    """Fused 4-layer MLP forward for one batch tile.

    Matmuls run on the MXU in bf16 with f32 accumulation. The bias/ReLU
    epilogue runs in bf16 on chips with a bf16 VPU (halves spill ld/st
    traffic), in f32 otherwise. Activations never leave VMEM.
    """

    def layer(h, w_ref, b_ref, relu):
        acc = jnp.dot(h, w_ref[...], preferred_element_type=jnp.float32)
        if bf16_epilogue:
            y = acc.astype(jnp.bfloat16) + b_ref[...]
            if relu:
                y = jnp.maximum(y, 0)
            return y
        else:
            y = acc + b_ref[...]
            if relu:
                return jnp.maximum(y, 0.0).astype(jnp.bfloat16)
            return y

    def kernel(x_ref,
               w1_ref, b1_ref,
               w2_ref, b2_ref,
               w3_ref, b3_ref,
               w4_ref, b4_ref,
               o_ref):
        h = x_ref[...]                      # already bf16 (streamed as bf16)
        h = layer(h, w1_ref, b1_ref, True)
        h = layer(h, w2_ref, b2_ref, True)
        h = layer(h, w3_ref, b3_ref, True)
        out = layer(h, w4_ref, b4_ref, False)
        o_ref[...] = out.astype(o_ref.dtype)

    return kernel


def prepare_encoder_params(params, *, bf16_epilogue=None):
    """One-time cast/pad of the weights (hoisted out of the forward path)."""
    if bf16_epilogue is None:
        bf16_epilogue = _default_bf16_epilogue()

    (w1, b1), (w2, b2), (w3, b3), (w4, b4) = params
    in_dim = w1.shape[0]
    latent_dim = w4.shape[1]
    n_pad = _round_up(latent_dim, 128)      # 64 -> 128: lane-dense output store
    bias_dt = jnp.bfloat16 if bf16_epilogue else jnp.float32

    weights = (
        w1.astype(jnp.bfloat16),            # (784, 512): K=784 stays unpadded
        b1.reshape(1, -1).astype(bias_dt),
        w2.astype(jnp.bfloat16),
        b2.reshape(1, -1).astype(bias_dt),
        w3.astype(jnp.bfloat16),
        b3.reshape(1, -1).astype(bias_dt),
        jnp.pad(w4, ((0, 0), (0, n_pad - latent_dim))).astype(jnp.bfloat16),
        jnp.pad(b4.reshape(1, -1), ((0, 0), (0, n_pad - latent_dim))).astype(bias_dt),
    )
    return {
        "weights": weights,
        "in_dim": in_dim,
        "latent_dim": latent_dim,
        "n_pad": n_pad,
        "bf16_epilogue": bf16_epilogue,
    }


def encoder_forward(x, prepared, *, block_m=None, core_parallel=False):
    """x: (B, C, H, W) or (B, 784). Returns (B, latent_dim) in f32.

    core_parallel=True shards the batch grid across v7x's two TensorCores
    (only useful when there are >= 2 batch tiles).
    """
    b = x.shape[0]
    # x.view(x.size(0), -1); stream the input as bf16 (halves the only
    # per-step DMA; numerics identical since the kernel used bf16 anyway).
    x2d = x.reshape(b, -1).astype(jnp.bfloat16)
    in_dim = x2d.shape[1]
    assert in_dim == prepared["in_dim"], (in_dim, prepared["in_dim"])

    weights = prepared["weights"]
    n_pad = prepared["n_pad"]
    latent_dim = prepared["latent_dim"]

    if block_m is None:
        # Sweepable; multiple of 16 (bf16 sublane pack). Larger tiles give
        # fewer grid steps and better overlap for big batches.
        block_m = min(512, _round_up(b, 16))
    num_m = pl.cdiv(b, block_m)             # partial last tile is fine

    kernel = _make_encoder_kernel(prepared["bf16_epilogue"])

    # Weights/biases: same block every grid step -> stay resident in VMEM.
    resident = lambda arr: pl.BlockSpec(arr.shape, lambda i: (0, 0))

    sem = pltpu.CORE_PARALLEL if core_parallel else "parallel"

    out = pl.pallas_call(
        kernel,
        out_shape=jax.ShapeDtypeStruct((b, n_pad), jnp.float32),
        grid=(num_m,),
        in_specs=[pl.BlockSpec((block_m, in_dim), lambda i: (i, 0))]
                 + [resident(w) for w in weights],
        out_specs=pl.BlockSpec((block_m, n_pad), lambda i: (i, 0)),
        compiler_params=pltpu.CompilerParams(dimension_semantics=(sem,)),
    )(x2d, *weights)

    # Drop the zero-padded latent columns (64..127).
    return out[:, :latent_dim]


def init_params(key, input_dim=784, latent_dim=64):
    """Deterministic synthetic init matching the nn.Linear shapes (f32)."""
    dims = [input_dim, 512, 256, 128, latent_dim]
    params = []
    for i in range(4):
        key, kw, kb = jax.random.split(key, 3)
        bound = 1.0 / jnp.sqrt(dims[i])
        w = jax.random.uniform(kw, (dims[i], dims[i + 1]), jnp.float32, -bound, bound)
        b = jax.random.uniform(kb, (1, dims[i + 1]), jnp.float32, -bound, bound)
        params.append((w, b))
    return params


def encoder_reference(x, params):
    """Plain-JAX f32 reference for correctness checking."""
    h = x.reshape(x.shape[0], -1)
    for i, (w, b) in enumerate(params):
        h = h @ w + b
        if i < 3:
            h = jnp.maximum(h, 0.0)
    return h


if __name__ == "__main__":
    key = jax.random.PRNGKey(0)
    key, kx = jax.random.split(key)

    # Batch of 2 single-channel 28x28 "images" (NCHW), flattened to 784 inside.
    x = jax.random.normal(kx, (2, 1, 28, 28), dtype=jnp.float32)
    params = init_params(key)

    # One-time weight preparation (cast/pad hoisted out of the forward path).
    prepared = prepare_encoder_params(params)

    fwd = jax.jit(lambda xx: encoder_forward(xx, prepared))
    out = jax.block_until_ready(fwd(x))

    ref = encoder_reference(x, params)
    assert out.shape == (2, 64), out.shape
    # bf16 matmul inputs / epilogue (f32 accumulation) -> loosened tolerance.
    max_err = float(jnp.max(jnp.abs(out - ref)))
    assert jnp.allclose(out, ref, atol=5e-2, rtol=5e-2), max_err

    print("KERNEL_OK")
</pallas_src>

<mosaic_0001>
module attributes {stable_mosaic.version = 11 : i64} {
  func.func @kernel(%arg0: i32, %arg1: memref<16x784xbf16, #tpu.memory_space<vmem>>, %arg2: memref<784x512xbf16, #tpu.memory_space<vmem>>, %arg3: memref<1x512xbf16, #tpu.memory_space<vmem>>, %arg4: memref<512x256xbf16, #tpu.memory_space<vmem>>, %arg5: memref<1x256xbf16, #tpu.memory_space<vmem>>, %arg6: memref<256x128xbf16, #tpu.memory_space<vmem>>, %arg7: memref<1x128xbf16, #tpu.memory_space<vmem>>, %arg8: memref<128x128xbf16, #tpu.memory_space<vmem>>, %arg9: memref<1x128xbf16, #tpu.memory_space<vmem>>, %arg10: memref<16x128xf32, #tpu.memory_space<vmem>>) attributes {dimension_semantics = [#tpu.dimension_semantics<parallel>], iteration_bounds = array<i64: 1>, scalar_prefetch = 0 : i64, scratch_operands = 0 : i64, tpu.core_type = #tpu.core_type<tc>, window_params = [{transform_indices = @transform_0, window_bounds = array<i64: 16, 784>}, {pipeline_mode = #tpu.pipeline_mode<synchronous>, transform_indices = @transform_1, window_bounds = array<i64: 784, 512>}, {pipeline_mode = #tpu.pipeline_mode<synchronous>, transform_indices = @transform_2, window_bounds = array<i64: 1, 512>}, {pipeline_mode = #tpu.pipeline_mode<synchronous>, transform_indices = @transform_3, window_bounds = array<i64: 512, 256>}, {pipeline_mode = #tpu.pipeline_mode<synchronous>, transform_indices = @transform_4, window_bounds = array<i64: 1, 256>}, {pipeline_mode = #tpu.pipeline_mode<synchronous>, transform_indices = @transform_5, window_bounds = array<i64: 256, 128>}, {pipeline_mode = #tpu.pipeline_mode<synchronous>, transform_indices = @transform_6, window_bounds = array<i64: 1, 128>}, {pipeline_mode = #tpu.pipeline_mode<synchronous>, transform_indices = @transform_7, window_bounds = array<i64: 128, 128>}, {pipeline_mode = #tpu.pipeline_mode<synchronous>, transform_indices = @transform_8, window_bounds = array<i64: 1, 128>}, {transform_indices = @transform_9, window_bounds = array<i64: 16, 128>}]} {
    %c0 = arith.constant 0 : index
    %c0_0 = arith.constant 0 : index
    %0 = vector.load %arg1[%c0, %c0_0] : memref<16x784xbf16, #tpu.memory_space<vmem>>, vector<16x784xbf16>
    %c0_1 = arith.constant 0 : index
    %c0_2 = arith.constant 0 : index
    %1 = vector.load %arg2[%c0_1, %c0_2] : memref<784x512xbf16, #tpu.memory_space<vmem>>, vector<784x512xbf16>
    %cst = arith.constant dense<0.000000e+00> : vector<16x512xf32>
    %2 = tpu.matmul %0, %1, %cst {dimension_numbers = #tpu.dot_dimension_numbers<[1], [0], [0], [1], [0, 0, 1, 1], [], []>} : vector<16x784xbf16>, vector<784x512xbf16>, vector<16x512xf32> -> vector<16x512xf32>
    %3 = arith.truncf %2 : vector<16x512xf32> to vector<16x512xbf16>
    %c0_3 = arith.constant 0 : index
    %c0_4 = arith.constant 0 : index
    %4 = vector.load %arg3[%c0_3, %c0_4] : memref<1x512xbf16, #tpu.memory_space<vmem>>, vector<1x512xbf16>
    %5 = vector.broadcast %4 : vector<1x512xbf16> to vector<16x512xbf16>
    %6 = arith.addf %3, %5 : vector<16x512xbf16>
    %cst_5 = arith.constant 0.000000e+00 : bf16
    %7 = vector.broadcast %cst_5 : bf16 to vector<16x512xbf16>
    %8 = arith.maximumf %6, %7 : vector<16x512xbf16>
    %c0_6 = arith.constant 0 : index
    %c0_7 = arith.constant 0 : index
    %9 = vector.load %arg4[%c0_6, %c0_7] : memref<512x256xbf16, #tpu.memory_space<vmem>>, vector<512x256xbf16>
    %cst_8 = arith.constant dense<0.000000e+00> : vector<16x256xf32>
    %10 = tpu.matmul %8, %9, %cst_8 {dimension_numbers = #tpu.dot_dimension_numbers<[1], [0], [0], [1], [0, 0, 1, 1], [], []>} : vector<16x512xbf16>, vector<512x256xbf16>, vector<16x256xf32> -> vector<16x256xf32>
    %11 = arith.truncf %10 : vector<16x256xf32> to vector<16x256xbf16>
    %c0_9 = arith.constant 0 : index
    %c0_10 = arith.constant 0 : index
    %12 = vector.load %arg5[%c0_9, %c0_10] : memref<1x256xbf16, #tpu.memory_space<vmem>>, vector<1x256xbf16>
    %13 = vector.broadcast %12 : vector<1x256xbf16> to vector<16x256xbf16>
    %14 = arith.addf %11, %13 : vector<16x256xbf16>
    %cst_11 = arith.constant 0.000000e+00 : bf16
    %15 = vector.broadcast %cst_11 : bf16 to vector<16x256xbf16>
    %16 = arith.maximumf %14, %15 : vector<16x256xbf16>
    %c0_12 = arith.constant 0 : index
    %c0_13 = arith.constant 0 : index
    %17 = vector.load %arg6[%c0_12, %c0_13] : memref<256x128xbf16, #tpu.memory_space<vmem>>, vector<256x128xbf16>
    %cst_14 = arith.constant dense<0.000000e+00> : vector<16x128xf32>
    %18 = tpu.matmul %16, %17, %cst_14 {dimension_numbers = #tpu.dot_dimension_numbers<[1], [0], [0], [1], [0, 0, 1, 1], [], []>} : vector<16x256xbf16>, vector<256x128xbf16>, vector<16x128xf32> -> vector<16x128xf32>
    %19 = arith.truncf %18 : vector<16x128xf32> to vector<16x128xbf16>
    %c0_15 = arith.constant 0 : index
    %c0_16 = arith.constant 0 : index
    %20 = vector.load %arg7[%c0_15, %c0_16] : memref<1x128xbf16, #tpu.memory_space<vmem>>, vector<1x128xbf16>
    %21 = vector.broadcast %20 : vector<1x128xbf16> to vector<16x128xbf16>
    %22 = arith.addf %19, %21 : vector<16x128xbf16>
    %cst_17 = arith.constant 0.000000e+00 : bf16
    %23 = vector.broadcast %cst_17 : bf16 to vector<16x128xbf16>
    %24 = arith.maximumf %22, %23 : vector<16x128xbf16>
    %c0_18 = arith.constant 0 : index
    %c0_19 = arith.constant 0 : index
    %25 = vector.load %arg8[%c0_18, %c0_19] : memref<128x128xbf16, #tpu.memory_space<vmem>>, vector<128x128xbf16>
    %cst_20 = arith.constant dense<0.000000e+00> : vector<16x128xf32>
    %26 = tpu.matmul %24, %25, %cst_20 {dimension_numbers = #tpu.dot_dimension_numbers<[1], [0], [0], [1], [0, 0, 1, 1], [], []>} : vector<16x128xbf16>, vector<128x128xbf16>, vector<16x128xf32> -> vector<16x128xf32>
    %27 = arith.truncf %26 : vector<16x128xf32> to vector<16x128xbf16>
    %c0_21 = arith.constant 0 : index
    %c0_22 = arith.constant 0 : index
    %28 = vector.load %arg9[%c0_21, %c0_22] : memref<1x128xbf16, #tpu.memory_space<vmem>>, vector<1x128xbf16>
    %29 = vector.broadcast %28 : vector<1x128xbf16> to vector<16x128xbf16>
    %30 = arith.addf %27, %29 : vector<16x128xbf16>
    %31 = arith.extf %30 : vector<16x128xbf16> to vector<16x128xf32>
    %c0_23 = arith.constant 0 : index
    %c0_24 = arith.constant 0 : index
    %32 = vector.load %arg10[%c0_23, %c0_24] : memref<16x128xf32, #tpu.memory_space<vmem>>, vector<16x128xf32>
    tpu.vector_store %arg10[%c0_23, %c0_24], %31 {strides = array<i32>} : memref<16x128xf32, #tpu.memory_space<vmem>>, vector<16x128xf32>,
    return
  }
  func.func @transform_0(%arg0: i32) -> (i32, i32) {
    %c0_i32 = arith.constant 0 : i32
    %c0_i32_0 = arith.constant 0 : i32
    return %arg0, %c0_i32 : i32, i32
  }
  func.func @transform_1(%arg0: i32) -> (i32, i32) {
    %c0_i32 = arith.constant 0 : i32
    %c0_i32_0 = arith.constant 0 : i32
    %c0_i32_1 = arith.constant 0 : i32
    return %c0_i32, %c0_i32_0 : i32, i32
  }
  func.func @transform_2(%arg0: i32) -> (i32, i32) {
    %c0_i32 = arith.constant 0 : i32
    %c0_i32_0 = arith.constant 0 : i32
    %c0_i32_1 = arith.constant 0 : i32
    return %c0_i32, %c0_i32_0 : i32, i32
  }
  func.func @transform_3(%arg0: i32) -> (i32, i32) {
    %c0_i32 = arith.constant 0 : i32
    %c0_i32_0 = arith.constant 0 : i32
    %c0_i32_1 = arith.constant 0 : i32
    return %c0_i32, %c0_i32_0 : i32, i32
  }
  func.func @transform_4(%arg0: i32) -> (i32, i32) {
    %c0_i32 = arith.constant 0 : i32
    %c0_i32_0 = arith.constant 0 : i32
    %c0_i32_1 = arith.constant 0 : i32
    return %c0_i32, %c0_i32_0 : i32, i32
  }
  func.func @transform_5(%arg0: i32) -> (i32, i32) {
    %c0_i32 = arith.constant 0 : i32
    %c0_i32_0 = arith.constant 0 : i32
    %c0_i32_1 = arith.constant 0 : i32
    return %c0_i32, %c0_i32_0 : i32, i32
  }
  func.func @transform_6(%arg0: i32) -> (i32, i32) {
    %c0_i32 = arith.constant 0 : i32
    %c0_i32_0 = arith.constant 0 : i32
    %c0_i32_1 = arith.constant 0 : i32
    return %c0_i32, %c0_i32_0 : i32, i32
  }
  func.func @transform_7(%arg0: i32) -> (i32, i32) {
    %c0_i32 = arith.constant 0 : i32
    %c0_i32_0 = arith.constant 0 : i32
    %c0_i32_1 = arith.constant 0 : i32
    return %c0_i32, %c0_i32_0 : i32, i32
  }
  func.func @transform_8(%arg0: i32) -> (i32, i32) {
    %c0_i32 = arith.constant 0 : i32
    %c0_i32_0 = arith.constant 0 : i32
    %c0_i32_1 = arith.constant 0 : i32
    return %c0_i32, %c0_i32_0 : i32, i32
  }
  func.func @transform_9(%arg0: i32) -> (i32, i32) {
    %c0_i32 = arith.constant 0 : i32
    %c0_i32_0 = arith.constant 0 : i32
    return %arg0, %c0_i32 : i32, i32
  }
}

</mosaic_0001>

<bundles_post_ra>
// kernel: _lambda_.1
= control target key start
LH: loop header
LB: loop body
LE: loop exit
PB: predicated region body
PF: predicated region fallthrough
CT: control target
= control target key end

     0   :  { %14 = vsyncpa [#allocation3], 0  ;;  %s4454_s0 = inlined_call_operand.vmem [shape: bf16[2,784], index: 0, kind: input, shape index: {}]   ;;  %s4455_s1 = inlined_call_operand.hbm [shape: bf16[784,512], index: 1, kind: input, shape index: {}]   ;;  %s4456_s2 = inlined_call_operand.hbm [shape: bf16[1,512], index: 2, kind: input, shape index: {}]   ;;  %s4457_s3 = inlined_call_operand.hbm [shape: bf16[512,256], index: 3, kind: input, shape index: {}]   ;;  %s4458_s4 = inlined_call_operand.vmem [shape: bf16[1,256], index: 4, kind: input, shape index: {}]   ;;  %s4459_s5 = inlined_call_operand.vmem [shape: bf16[256,128], index: 5, kind: input, shape index: {}]   ;;  %s4460_s6 = inlined_call_operand.vmem [shape: bf16[1,128], index: 6, kind: input, shape index: {}]   ;;  %s4461_s7 = inlined_call_operand.hbm [shape: bf16[128,128], index: 7, kind: input, shape index: {}]   ;;  %s4462_s8 = inlined_call_operand.vmem [shape: bf16[1,128], index: 8, kind: input, shape index: {}]   ;;  %s4463_s9 = inlined_call_operand.hbm [shape: f32[2,128], index: 9, kind: output, shape index: {}]  }
   0x1   :  { %15 = vsyncpa [#allocation6], 0 }
   0x2   :  { %16 = vsyncpa [#allocation9], 0  ;;  %s38_s11 = sshll.u32 %s4456_s2, 4  ;;  %s39_s11 = int_to_ptr.hbm [resolvable:$true] %s38_s11 }
   0x3   :  { %17 = vsyncpa [#allocation4], 0  ;;  %s4165_s12 = smov [#allocation5]   ;;  %s24_s16 = sshll.u32 %s4455_s1, 4  ;;  %s25_s16 = int_to_ptr.hbm [resolvable:$true] %s24_s16 }
   0x4   :  { %s40_s13 = sshll.u32 %s4165_s12, 4  ;;  %s4166_s17 = smov [#allocation2]   ;;  %s41_s13 = int_to_ptr.vmem [resolvable:$true] %s40_s13 }
   0x5   :  { %43 = dma.hbm_to_vmem [thread:$0]  %s39_s11, 64, %s41_s13, [#allocation6]  }
   0x6   :  { %s26_s18 = sshll.u32 %s4166_s17, 4  ;;  %s4167_s19 = smov 256   ;;  %s27_s18 = int_to_ptr.vmem [resolvable:$true] %s26_s18 }
   0x7   :  { %s4168_s20 = smov 16   ;;  %s48_s2 = sshll.u32 %s4457_s3, 4  ;;  %s49_s2 = int_to_ptr.hbm [resolvable:$true] %s48_s2 }
   0x8   :  { %32 = dma.hbm_to_vmem [thread:$0]  %s25_s16, 25088, %s27_s18, [#allocation3], %s4167_s19, %s4167_s19, %s4168_s20  }
   0x9   :  { %s4169_s23 = smov [#allocation7]   ;;  %s67_s1 = sshll.u32 %s4461_s7, 4  ;;  %s68_s1 = int_to_ptr.hbm [resolvable:$true] %s67_s1 }
   0xa   :  { %s50_s24 = sshll.u32 %s4169_s23, 4  ;;  %s4170_s27 = smov 128   ;;  %s51_s24 = int_to_ptr.vmem [resolvable:$true] %s50_s24 }
   0xb   :  { %s4171_s28 = smov 8   ;;  %s4172_s29 = smov [#allocation8]  }
   0xc   :  { %56 = dma.hbm_to_vmem [thread:$0]  %s49_s2, 8192, %s51_s24, [#allocation6], %s4170_s27, %s4170_s27, %s4171_s28  }
   0xd   :  { %s69_s30 = sshll.u32 %s4172_s29, 4  ;;  %s4173_s10 = smov 64   ;;  %s70_s30 = int_to_ptr.vmem [resolvable:$true] %s69_s30 }
   0xe   :  { %s4174_s11 = smov 4  }
   0xf   :  { %75 = dma.hbm_to_vmem [thread:$0]  %s68_s1, 1024, %s70_s30, [#allocation9], %s4173_s10, %s4173_s10, %s4174_s11  }
  0x10   :  { %4157 = dma.done.wait [#allocation3], 25088  }
  0x11   :  { %4158 = vsyncadd [#allocation3], 4294942208 }
  0x12   :  { %4159 = dma.done.wait [#allocation6], 8256  }
  0x13   :  { %4160 = vsyncadd [#allocation6], 4294959040 }
  0x14   :  { %4161 = dma.done.wait [#allocation9], 1024  }
  0x15   :  { %4162 = vsyncadd [#allocation9], 4294966272  ;;  %v2714_v0 = vld [vmem:[#allocation2 + $0xe0] sm:$0xf]  ;;  %v3770_v1 = vld [vmem:[#allocation2 + $0xec] sm:$0xf0] }
  0x16   :  { %v2842_v2 = vld [vmem:[#allocation2 + $0x1e0] sm:$0xf]  ;;  %v2715_v3 = vor.u32 %v3770_v1, %v2714_v0  ;;  %v3802_v4 = vld [vmem:[#allocation2 + $0x1ec] sm:$0xf0]  ;;  %vm1315_vm0 = vcmask 130048  }
  0x17   :  { %v2970_v5 = vld [vmem:[#allocation2 + $0x2e0] sm:$0xf]  ;;  %v3834_v6 = vld [vmem:[#allocation2 + $0x2ec] sm:$0xf0]  ;;  %v2843_v7 = vor.u32 %v3802_v4, %v2842_v2 }
  0x18   :  { %v2971_v8 = vor.u32 %v3834_v6, %v2970_v5  ;;  %v3098_v9 = vld [vmem:[#allocation2 + $0x3e0] sm:$0xf]  ;;  %v3866_v10 = vld [vmem:[#allocation2 + $0x3ec] sm:$0xf0]  ;;  %1318 = vmatpush.bf16.msra.mxu0 %v2715_v3 }
  0x19   :  { %v2698_v11 = vld [vmem:[#allocation2 + $0xc0] sm:$0xf]  ;;  %v3099_v12 = vor.u32 %v3866_v10, %v3098_v9  ;;  %v3766_v13 = vld [vmem:[#allocation2 + $0xcc] sm:$0xf0]  ;;  %1332 = vmatpush.bf16.msra.mxu1 %v2843_v7 }
  0x1a   :  { %v2826_v14 = vld [vmem:[#allocation2 + $0x1c0] sm:$0xf]  ;;  %v3798_v15 = vld [vmem:[#allocation2 + $0x1cc] sm:$0xf0]  ;;  %1346 = vmatpush.bf16.msra.mxu2 %v2971_v8  ;;  %v2699_v16 = vor.u32 %v3766_v13, %v2698_v11 }
  0x1b   :  { %v2827_v17 = vor.u32 %v3798_v15, %v2826_v14  ;;  %v2954_v18 = vld [vmem:[#allocation2 + $0x2c0] sm:$0xf]  ;;  %v3830_v19 = vld [vmem:[#allocation2 + $0x2cc] sm:$0xf0]  ;;  %1360 = vmatpush.bf16.msra.mxu3 %v3099_v12 }
  0x1c   :  { %v3082_v20 = vld [vmem:[#allocation2 + $0x3c0] sm:$0xf]  ;;  %v2955_v21 = vor.u32 %v3830_v19, %v2954_v18  ;;  %v3862_v22 = vld [vmem:[#allocation2 + $0x3cc] sm:$0xf0]  ;;  %1319 = vmatpush.bf16.msra.mxu0 %v2699_v16 }
  0x1d   :  { %v2682_v23 = vld [vmem:[#allocation2 + $0xa0] sm:$0xf]  ;;  %v3762_v24 = vld [vmem:[#allocation2 + $0xac] sm:$0xf0]  ;;  %v3083_v25 = vor.u32 %v3862_v22, %v3082_v20  ;;  %1333 = vmatpush.bf16.msra.mxu1 %v2827_v17 }
  0x1e   :  { %v2810_v26 = vld [vmem:[#allocation2 + $0x1a0] sm:$0xf]  ;;  %v3794_v27 = vld [vmem:[#allocation2 + $0x1ac] sm:$0xf0]  ;;  %v2683_v29 = vor.u32 %v3762_v24, %v2682_v23  ;;  %1347 = vmatpush.bf16.msra.mxu2 %v2955_v21  ;;  %v95_v23 = vld [vmem:[%s4454_s0] sm:$0x7f] }
  0x1f   :  { %v2938_v28 = vld [vmem:[#allocation2 + $0x2a0] sm:$0xf]  ;;  %v3826_v30 = vld [vmem:[#allocation2 + $0x2ac] sm:$0xf0]  ;;  %v2811_v33 = vor.u32 %v3794_v27, %v2810_v26  ;;  %1361 = vmatpush.bf16.msra.mxu3 %v3083_v25  ;;  %300 = vst [vmem:[#allocation1] ss:$9 sm:$0xff] %v95_v23 }
  0x20   :  { %v3066_v31 = vld [vmem:[#allocation2 + $0x3a0] sm:$0xf]  ;;  %v3858_v32 = vld [vmem:[#allocation2 + $0x3ac] sm:$0xf0]  ;;  %v2939_v34 = vor.u32 %v3826_v30, %v2938_v28  ;;  %1320 = vmatpush.bf16.msra.mxu0 %v2683_v29  ;;  %v2812_v23 = vld [vmem:[#allocation2 + $0x1b0] sm:$0xf0] }
  0x21   :  { %v2666_v35 = vld [vmem:[#allocation2 + $0x80] sm:$0xf]  ;;  %v3758_v36 = vld [vmem:[#allocation2 + $0x8c] sm:$0xf0]  ;;  %v3067_v38 = vor.u32 %v3858_v32, %v3066_v31  ;;  %1334 = vmatpush.bf16.msra.mxu1 %v2811_v33 }
  0x22   :  { %v2794_v37 = vld [vmem:[#allocation2 + $0x180] sm:$0xf]  ;;  %v3790_v39 = vld [vmem:[#allocation2 + $0x18c] sm:$0xf0]  ;;  %v2667_v44 = vor.u32 %v3758_v36, %v2666_v35  ;;  %1348 = vmatpush.bf16.msra.mxu2 %v2939_v34  ;;  %v3768_v34 = vld [vmem:[#allocation2 + $0xe4] sm:$0xf] }
  0x23   :  { %v2922_v40 = vld [vmem:[#allocation2 + $0x280] sm:$0xf]  ;;  %v3822_v41 = vld [vmem:[#allocation2 + $0x28c] sm:$0xf0]  ;;  %v2795_v45 = vor.u32 %v3790_v39, %v2794_v37  ;;  %1362 = vmatpush.bf16.msra.mxu3 %v3067_v38  ;;  %v2716_v35 = vld [vmem:[#allocation2 + $0xf0] sm:$0xf0] }
  0x24   :  { %v3050_v42 = vld [vmem:[#allocation2 + $0x380] sm:$0xf]  ;;  %v3854_v43 = vld [vmem:[#allocation2 + $0x38c] sm:$0xf0]  ;;  %v2923_v46 = vor.u32 %v3822_v41, %v2922_v40  ;;  %1321 = vmatpush.bf16.msra.mxu0 %v2667_v44  ;;  %v97_v36 = vld [vmem:[%s4454_s0 + $0xe] sm:$0x7f] }
  0x25   :  { %v2650_v47 = vld [vmem:[#allocation2 + $0x60] sm:$0xf]  ;;  %v3754_v48 = vld [vmem:[#allocation2 + $0x6c] sm:$0xf0]  ;;  %v3051_v50 = vor.u32 %v3854_v43, %v3050_v42  ;;  %1335 = vmatpush.bf16.msra.mxu1 %v2795_v45  ;;  %v99_v38 = vld [vmem:[%s4454_s0 + $0x1c] sm:$0x7f] }
  0x26   :  { %v2778_v49 = vld [vmem:[#allocation2 + $0x160] sm:$0xf]  ;;  %v3786_v51 = vld [vmem:[#allocation2 + $0x16c] sm:$0xf0]  ;;  %v2651_v56 = vor.u32 %v3754_v48, %v2650_v47  ;;  %1349 = vmatpush.bf16.msra.mxu2 %v2923_v46  ;;  %v102_v44 = vld [vmem:[%s4454_s0 + $0x31] sm:$0x7f] }
  0x27   :  { %v2906_v52 = vld [vmem:[#allocation2 + $0x260] sm:$0xf]  ;;  %v3818_v53 = vld [vmem:[#allocation2 + $0x26c] sm:$0xf0]  ;;  %v2779_v57 = vor.u32 %v3786_v51, %v2778_v49  ;;  %1363 = vmatpush.bf16.msra.mxu3 %v3051_v50  ;;  %306 = vst [vmem:[#allocation1 + $0x2] ss:$9 sm:$0xff] %v97_v36 }
  0x28   :  { %v3034_v54 = vld [vmem:[#allocation2 + $0x360] sm:$0xf]  ;;  %v3850_v55 = vld [vmem:[#allocation2 + $0x36c] sm:$0xf0]  ;;  %v2907_v58 = vor.u32 %v3818_v53, %v2906_v52  ;;  %1322 = vmatpush.bf16.msra.mxu0 %v2651_v56  ;;  %v2719_v52 = vor.u32 %v3768_v34, %v2716_v35  ;;  %312 = vst [vmem:[#allocation1 + $0x4] ss:$9 sm:$0xff] %v99_v38 }
  0x29   :  { %v2634_v59 = vld [vmem:[#allocation2 + $0x40] sm:$0xf]  ;;  %v3750_v60 = vld [vmem:[#allocation2 + $0x4c] sm:$0xf0]  ;;  %v3035_v62 = vor.u32 %v3850_v55, %v3034_v54  ;;  %1336 = vmatpush.bf16.msra.mxu1 %v2779_v57  ;;  %v3764_v56 = vld [vmem:[#allocation2 + $0xc4] sm:$0xf] }
  0x2a   :  { %v2762_v61 = vld [vmem:[#allocation2 + $0x140] sm:$0xf]  ;;  %v3782_v63 = vld [vmem:[#allocation2 + $0x14c] sm:$0xf0]  ;;  %v2635_v4 = vor.u32 %v3750_v60, %v2634_v59  ;;  %1350 = vmatpush.bf16.msra.mxu2 %v2907_v58  ;;  %v2700_v57 = vld [vmem:[#allocation2 + $0xd0] sm:$0xf0] }
  0x2b   :  { %v2890_v0 = vld [vmem:[#allocation2 + $0x240] sm:$0xf]  ;;  %v3814_v1 = vld [vmem:[#allocation2 + $0x24c] sm:$0xf0]  ;;  %v2763_v6 = vor.u32 %v3782_v63, %v2762_v61  ;;  %1364 = vmatpush.bf16.msra.mxu3 %v3035_v62  ;;  %321 = vst [vmem:[#allocation1 + $0x7] ss:$9 sm:$0xff] %v102_v44  ;;  %v2703_v60 = vor.u32 %v3764_v56, %v2700_v57 }
  0x2c   :  { %v3018_v2 = vld [vmem:[#allocation2 + $0x340] sm:$0xf]  ;;  %v3846_v3 = vld [vmem:[#allocation2 + $0x34c] sm:$0xf0]  ;;  %v2891_v7 = vor.u32 %v3814_v1, %v2890_v0  ;;  %1323 = vmatpush.bf16.msra.mxu0 %v2635_v4  ;;  %v3800_v61 = vld [vmem:[#allocation2 + $0x1e4] sm:$0xf] }
  0x2d   :  { %v2618_v5 = vld [vmem:[#allocation2 + $0x20] sm:$0xf]  ;;  %v3746_v8 = vld [vmem:[#allocation2 + $0x2c] sm:$0xf0]  ;;  %v3019_v11 = vor.u32 %v3846_v3, %v3018_v2  ;;  %1337 = vmatpush.bf16.msra.mxu1 %v2763_v6  ;;  %v2844_v62 = vld [vmem:[#allocation2 + $0x1f0] sm:$0xf0] }
  0x2e   :  { %v2746_v9 = vld [vmem:[#allocation2 + $0x120] sm:$0xf]  ;;  %v3778_v10 = vld [vmem:[#allocation2 + $0x12c] sm:$0xf0]  ;;  %v2619_v18 = vor.u32 %v3746_v8, %v2618_v5  ;;  %1351 = vmatpush.bf16.msra.mxu2 %v2891_v7  ;;  %v3760_v3 = vld [vmem:[#allocation2 + $0xa4] sm:$0xf]  ;;  %v2847_v5 = vor.u32 %v3800_v61, %v2844_v62 }
  0x2f   :  { %v2874_v12 = vld [vmem:[#allocation2 + $0x220] sm:$0xf]  ;;  %v3810_v13 = vld [vmem:[#allocation2 + $0x22c] sm:$0xf0]  ;;  %v2747_v24 = vor.u32 %v3778_v10, %v2746_v9  ;;  %1365 = vmatpush.bf16.msra.mxu3 %v3019_v11  ;;  %v2684_v4 = vld [vmem:[#allocation2 + $0xb0] sm:$0xf0] }
  0x30   :  { %v3002_v14 = vld [vmem:[#allocation2 + $0x320] sm:$0xf]  ;;  %v3842_v15 = vld [vmem:[#allocation2 + $0x32c] sm:$0xf0]  ;;  %v2875_v25 = vor.u32 %v3810_v13, %v2874_v12  ;;  %1324 = vmatpush.bf16.msra.mxu0 %v2619_v18  ;;  %v3796_v6 = vld [vmem:[#allocation2 + $0x1c4] sm:$0xf] }
  0x31   :  { %v2602_v16 = vld [vmem:[#allocation2] sm:$0xf]  ;;  %v3742_v17 = vld [vmem:[#allocation2 + $0xc] sm:$0xf0]  ;;  %v3003_v31 = vor.u32 %v3842_v15, %v3002_v14  ;;  %1338 = vmatpush.bf16.msra.mxu1 %v2747_v24  ;;  %v2828_v7 = vld [vmem:[#allocation2 + $0x1d0] sm:$0xf0] }
  0x32   :  { %v2730_v19 = vld [vmem:[#allocation2 + $0x100] sm:$0xf]  ;;  %v3774_v20 = vld [vmem:[#allocation2 + $0x10c] sm:$0xf0]  ;;  %v2603_v39 = vor.u32 %v3742_v17, %v2602_v16  ;;  %1352 = vmatpush.bf16.msra.mxu2 %v2875_v25  ;;  %v2687_v17 = vor.u32 %v3760_v3, %v2684_v4  ;;  %v3788_v34 = vld [vmem:[#allocation2 + $0x184] sm:$0xf] }
  0x33   :  { %v2858_v21 = vld [vmem:[#allocation2 + $0x200] sm:$0xf]  ;;  %v3806_v22 = vld [vmem:[#allocation2 + $0x20c] sm:$0xf0]  ;;  %v2731_v42 = vor.u32 %v3774_v20, %v2730_v19  ;;  %1366 = vmatpush.bf16.msra.mxu3 %v3003_v31  ;;  %v3756_v19 = vld [vmem:[#allocation2 + $0x84] sm:$0xf] }
  0x34   :  { %v2986_v26 = vld [vmem:[#allocation2 + $0x300] sm:$0xf]  ;;  %v3838_v27 = vld [vmem:[#allocation2 + $0x30c] sm:$0xf0]  ;;  %v2859_v43 = vor.u32 %v3806_v22, %v2858_v21  ;;  %1325 = vmatpush.bf16.msra.mxu0 %v2603_v39  ;;  %v2668_v20 = vld [vmem:[#allocation2 + $0x90] sm:$0xf0]  ;;  %v2831_v21 = vor.u32 %v3796_v6, %v2828_v7 }
  0x35   :  { %v3226_v28 = vld [vmem:[#allocation2 + $0x4e0] sm:$0xf]  ;;  %v3898_v29 = vld [vmem:[#allocation2 + $0x4ec] sm:$0xf0]  ;;  %v2987_v47 = vor.u32 %v3838_v27, %v2986_v26  ;;  %1339 = vmatpush.bf16.msra.mxu1 %v2731_v42  ;;  %v3792_v22 = vld [vmem:[#allocation2 + $0x1a4] sm:$0xf]  ;;  %v2671_v26 = vor.u32 %v3756_v19, %v2668_v20 }
  0x36   :  { %v96_v30 = vld [vmem:[%s4454_s0 + $0x7] sm:$0x7f]  ;;  %v3930_v33 = vld [vmem:[#allocation2 + $0x5ec] sm:$0xf0]  ;;  %v3227_v48 = vor.u32 %v3898_v29, %v3226_v28  ;;  %1353 = vmatpush.bf16.msra.mxu2 %v2859_v43  ;;  %v2796_v35 = vld [vmem:[#allocation2 + $0x190] sm:$0xf0] }
  0x37   :  { %v3354_v32 = vld [vmem:[#allocation2 + $0x5e0] sm:$0xf]  ;;  %v98_v37 = vld [vmem:[%s4454_s0 + $0x15] sm:$0x7f]  ;;  %303 = vst [vmem:[#allocation1 + $0x1] ss:$9 sm:$0xff] %v96_v30  ;;  %1367 = vmatpush.bf16.msra.mxu3 %v2987_v47 }
  0x38   :  { %v100_v40 = vld [vmem:[%s4454_s0 + $0x23] sm:$0x7f]  ;;  %v101_v41 = vld [vmem:[%s4454_s0 + $0x2a] sm:$0x7f]  ;;  %v3934_v46 = vld [vmem:[#allocation2 + $0x60c] sm:$0xf0]  ;;  %v3355_v51 = vor.u32 %v3930_v33, %v3354_v32  ;;  %1374 = vmatpush.bf16.msrb.mxu0 %v3227_v48  ;;  %v2815_v33 = vor.u32 %v3792_v22, %v2812_v23 }
  0x39   :  { %v3370_v45 = vld [vmem:[#allocation2 + $0x600] sm:$0xf]  ;;  %309 = vst [vmem:[#allocation1 + $0x3] ss:$9 sm:$0xff] %v98_v37  ;;  %v3894_v50 = vld [vmem:[#allocation2 + $0x4cc] sm:$0xf0] }
  0x3a   :  { %v3210_v49 = vld [vmem:[#allocation2 + $0x4c0] sm:$0xf]  ;;  %v3926_v54 = vld [vmem:[#allocation2 + $0x5cc] sm:$0xf0]  ;;  %315 = vst [vmem:[#allocation1 + $0x5] ss:$9 sm:$0xff] %v100_v40  ;;  %v3371_v55 = vor.u32 %v3934_v46, %v3370_v45  ;;  %1388 = vmatpush.bf16.msrb.mxu1 %v3355_v51  ;;  %v2799_v45 = vor.u32 %v3788_v34, %v2796_v35 }
  0x3b   :  { %v3338_v53 = vld [vmem:[#allocation2 + $0x5c0] sm:$0xf]  ;;  %318 = vst [vmem:[#allocation1 + $0x6] ss:$9 sm:$0xff] %v101_v41  ;;  %v3211_v58 = vor.u32 %v3894_v50, %v3210_v49  ;;  %1416 = vmatpush.bf16.msrb.mxu3 %v2719_v52  ;;  %v3890_v0 = vld [vmem:[#allocation2 + $0x4ac] sm:$0xf0] }
  0x3c   :  { %v3339_v59 = vor.u32 %v3926_v54, %v3338_v53  ;;  %1409 = vmatpush.bf16.msrb.mxu2 %v3371_v55  ;;  %v3194_v63 = vld [vmem:[#allocation2 + $0x4a0] sm:$0xf]  ;;  %v3922_v2 = vld [vmem:[#allocation2 + $0x5ac] sm:$0xf0]  ;;  %v3752_v31 = vld [vmem:[#allocation2 + $0x64] sm:$0xf] }
  0x3d   :  { %v3322_v1 = vld [vmem:[#allocation2 + $0x5a0] sm:$0xf]  ;;  %1375 = vmatpush.bf16.msrb.mxu0 %v3211_v58  ;;  %v3195_v9 = vor.u32 %v3890_v0, %v3194_v63  ;;  %v3886_v10 = vld [vmem:[#allocation2 + $0x48c] sm:$0xf0]  ;;  %v2652_v32 = vld [vmem:[#allocation2 + $0x70] sm:$0xf0] }
  0x3e   :  { %1389 = vmatpush.bf16.msrb.mxu1 %v3339_v59  ;;  %v3178_v8 = vld [vmem:[#allocation2 + $0x480] sm:$0xf]  ;;  %v3918_v12 = vld [vmem:[#allocation2 + $0x58c] sm:$0xf0]  ;;  %v3323_v16 = vor.u32 %v3922_v2, %v3322_v1  ;;  %v2655_v38 = vor.u32 %v3752_v31, %v2652_v32  ;;  %v3748_v43 = vld [vmem:[#allocation2 + $0x44] sm:$0xf] }
  0x3f   :  { %1417 = vmatpush.bf16.msrb.mxu3 %v2703_v60  ;;  %v3306_v11 = vld [vmem:[#allocation2 + $0x580] sm:$0xf]  ;;  %v3179_v24 = vor.u32 %v3886_v10, %v3178_v8  ;;  %v3882_v28 = vld [vmem:[#allocation2 + $0x46c] sm:$0xf0]  ;;  %v2636_v44 = vld [vmem:[#allocation2 + $0x50] sm:$0xf0] }
  0x40   :  { %v3307_v25 = vor.u32 %v3918_v12, %v3306_v11  ;;  %v3162_v27 = vld [vmem:[#allocation2 + $0x460] sm:$0xf]  ;;  %v3914_v30 = vld [vmem:[#allocation2 + $0x56c] sm:$0xf0]  ;;  %v3784_v46 = vld [vmem:[#allocation2 + $0x164] sm:$0xf]  ;;  %v2639_v54 = vor.u32 %v3748_v43, %v2636_v44 }
  0x41   :  { %1376 = vmatpush.bf16.msrb.mxu0 %v3195_v9  ;;  %v3290_v29 = vld [vmem:[#allocation2 + $0x560] sm:$0xf]  ;;  %v3163_v36 = vor.u32 %v3882_v28, %v3162_v27  ;;  %v3878_v40 = vld [vmem:[#allocation2 + $0x44c] sm:$0xf0]  ;;  %v2780_v47 = vld [vmem:[#allocation2 + $0x170] sm:$0xf0] }
  0x42   :  { %v4264_v13 = vld [vmem:[#allocation1 + $0x12] sm:$0xff]  ;;  %v4266_v14 = vld [vmem:[#allocation1 + $0x1b] sm:$0xff]  ;;  %v4272_v18 = vld [vmem:[#allocation1 + $0x9] sm:$0xff]  ;;  %1390 = vmatpush.bf16.msrb.mxu1 %v3323_v16  ;;  %v3291_v37 = vor.u32 %v3914_v30, %v3290_v29  ;;  %v2783_v61 = vor.u32 %v3784_v46, %v2780_v47 }
  0x43   :  { %v4268_v15 = vld [vmem:[#allocation1] sm:$0xff]  ;;  %1354 = vmatmul.bf16.vlgmr.msra.gmra.mxu2 %v4264_v13  ;;  %1368 = vmatmul.bf16.vlgmr.msra.gmra.mxu3 %v4266_v14  ;;  %v3146_v39 = vld [vmem:[#allocation2 + $0x440] sm:$0xf]  ;;  %v3910_v42 = vld [vmem:[#allocation2 + $0x54c] sm:$0xf0] }
  0x44   :  { %1430 = vmatpush.bf16.msra.mxu2 %v2847_v5  ;;  %1326 = vmatmul.bf16.vlgmr.msra.gmra.mxu0 %v4268_v15  ;;  %v3274_v41 = vld [vmem:[#allocation2 + $0x540] sm:$0xf]  ;;  %v3147_v49 = vor.u32 %v3878_v40, %v3146_v39  ;;  %v3874_v50 = vld [vmem:[#allocation2 + $0x42c] sm:$0xf0]  ;;  %v3744_v55 = vld [vmem:[#allocation2 + $0x24] sm:$0xf] }
  0x45   :  { %1340 = vmatmul.bf16.vlgmr.msra.gmra.mxu1 %v4272_v18  ;;  %1418 = vmatpush.bf16.msrb.mxu3 %v2687_v17  ;;  %v3130_v48 = vld [vmem:[#allocation2 + $0x420] sm:$0xf]  ;;  %v3906_v52 = vld [vmem:[#allocation2 + $0x52c] sm:$0xf0]  ;;  %v3275_v53 = vor.u32 %v3910_v42, %v3274_v41  ;;  %v2620_v56 = vld [vmem:[#allocation2 + $0x30] sm:$0xf0] }
  0x46   :  { %1377 = vmatpush.bf16.msrb.mxu0 %v3179_v24  ;;  %1391 = vmatpush.bf16.msrb.mxu1 %v3307_v25  ;;  %v3258_v51 = vld [vmem:[#allocation2 + $0x520] sm:$0xf]  ;;  %v4276_v57 = vld [vmem:[#allocation1 + $0x36] sm:$0xff]  ;;  %v4280_v59 = vld [vmem:[#allocation1 + $0x2d] sm:$0xff]  ;;  %v3131_v0 = vor.u32 %v3874_v50, %v3130_v48  ;;  %v2623_v3 = vor.u32 %v3744_v55, %v2620_v56 }
  0x47   :  { %v4278_v58 = vld [vmem:[#allocation1 + $0x24] sm:$0xff]  ;;  %v3780_v62 = vld [vmem:[#allocation2 + $0x144] sm:$0xf]  ;;  %v2764_v63 = vld [vmem:[#allocation2 + $0x150] sm:$0xf0]  ;;  %v3259_v2 = vor.u32 %v3906_v52, %v3258_v51 }
  0x48   :  { %1431 = vmatpush.bf16.msra.mxu2 %v2831_v21  ;;  %v1714_v60 = vld [vmem:[#allocation5] sm:$0xf]  ;;  %v3870_v4 = vld [vmem:[#allocation2 + $0x40c] sm:$0xf0]  ;;  %v3776_v7 = vld [vmem:[#allocation2 + $0x124] sm:$0xf]  ;;  %v2767_v11 = vor.u32 %v3780_v62, %v2764_v63 }
  0x49   :  { %1419 = vmatpush.bf16.msrb.mxu3 %v2671_v26  ;;  %1716 = vst [vmem:[#allocation1] ss:$9 sm:$0xff] %v1714_v60  ;;  %v3114_v1 = vld [vmem:[#allocation2 + $0x400] sm:$0xf]  ;;  %v3902_v6 = vld [vmem:[#allocation2 + $0x50c] sm:$0xf0] }
  0x4a   :  { %1378 = vmatpush.bf16.msrb.mxu0 %v3163_v36  ;;  %1392 = vmatpush.bf16.msrb.mxu1 %v3291_v37  ;;  %v3242_v5 = vld [vmem:[#allocation2 + $0x500] sm:$0xf]  ;;  %v3740_v8 = vld [vmem:[#allocation2 + $0x4] sm:$0xf]  ;;  %v2604_v9 = vld [vmem:[#allocation2 + $0x10] sm:$0xf0]  ;;  %v3115_v20 = vor.u32 %v3870_v4, %v3114_v1 }
  0x4b   :  { %v3832_v10 = vld [vmem:[#allocation2 + $0x2e4] sm:$0xf]  ;;  %v2972_v12 = vld [vmem:[#allocation2 + $0x2f0] sm:$0xf0]  ;;  %v3243_v23 = vor.u32 %v3902_v6, %v3242_v5  ;;  %v2607_v24 = vor.u32 %v3740_v8, %v2604_v9 }
  0x4c   :  { %1432 = vmatpush.bf16.msra.mxu2 %v2815_v33  ;;  %v3864_v16 = vld [vmem:[#allocation2 + $0x3e4] sm:$0xf]  ;;  %v3100_v17 = vld [vmem:[#allocation2 + $0x3f0] sm:$0xf0]  ;;  %v2975_v25 = vor.u32 %v3832_v10, %v2972_v12 }
  0x4d   :  { %1420 = vmatpush.bf16.msrb.mxu3 %v2655_v38  ;;  %v2748_v19 = vld [vmem:[#allocation2 + $0x130] sm:$0xf0]  ;;  %v3896_v21 = vld [vmem:[#allocation2 + $0x4e4] sm:$0xf]  ;;  %v3103_v26 = vor.u32 %v3864_v16, %v3100_v17 }
  0x4e   :  { %1379 = vmatpush.bf16.msrb.mxu0 %v3147_v49  ;;  %1393 = vmatpush.bf16.msrb.mxu1 %v3275_v53  ;;  %v3228_v22 = vld [vmem:[#allocation2 + $0x4f0] sm:$0xf0]  ;;  %v3772_v27 = vld [vmem:[#allocation2 + $0x104] sm:$0xf]  ;;  %v2751_v29 = vor.u32 %v3776_v7, %v2748_v19 }
  0x4f   :  { %v3828_v28 = vld [vmem:[#allocation2 + $0x2c4] sm:$0xf]  ;;  %v3231_v30 = vor.u32 %v3896_v21, %v3228_v22  ;;  %v2956_v31 = vld [vmem:[#allocation2 + $0x2d0] sm:$0xf0] }
  0x50   :  { %1433 = vmatpush.bf16.msra.mxu2 %v2799_v45  ;;  %v3860_v32 = vld [vmem:[#allocation2 + $0x3c4] sm:$0xf]  ;;  %v3084_v33 = vld [vmem:[#allocation2 + $0x3d0] sm:$0xf0]  ;;  %v2959_v39 = vor.u32 %v3828_v28, %v2956_v31 }
  0x51   :  { %1421 = vmatpush.bf16.msrb.mxu3 %v2639_v54  ;;  %v2732_v34 = vld [vmem:[#allocation2 + $0x110] sm:$0xf0]  ;;  %v3892_v35 = vld [vmem:[#allocation2 + $0x4c4] sm:$0xf]  ;;  %v3087_v40 = vor.u32 %v3860_v32, %v3084_v33 }
  0x52   :  { %1380 = vmatpush.bf16.msrb.mxu0 %v3131_v0  ;;  %1394 = vmatpush.bf16.msrb.mxu1 %v3259_v2  ;;  %v3212_v36 = vld [vmem:[#allocation2 + $0x4d0] sm:$0xf0]  ;;  %v3928_v37 = vld [vmem:[#allocation2 + $0x5e4] sm:$0xf]  ;;  %v2735_v42 = vor.u32 %v3772_v27, %v2732_v34 }
  0x53   :  { %3384 = vmatmul.msk.bf16.vlgmr.msrb.gmra.mxu2 %vm1315_vm0, %v4276_v57  ;;  %v3356_v38 = vld [vmem:[#allocation2 + $0x5f0] sm:$0xf0]  ;;  %v3824_v41 = vld [vmem:[#allocation2 + $0x2a4] sm:$0xf]  ;;  %v3215_v43 = vor.u32 %v3892_v35, %v3212_v36 }
  0x54   :  { %1434 = vmatpush.bf16.msra.mxu2 %v2783_v61  ;;  %v2940_v44 = vld [vmem:[#allocation2 + $0x2b0] sm:$0xf0]  ;;  %v3856_v45 = vld [vmem:[#allocation2 + $0x3a4] sm:$0xf]  ;;  %v3359_v47 = vor.u32 %v3928_v37, %v3356_v38 }
  0x55   :  { %1422 = vmatpush.bf16.msrb.mxu3 %v2623_v3  ;;  %v3068_v46 = vld [vmem:[#allocation2 + $0x3b0] sm:$0xf0]  ;;  %v3888_v48 = vld [vmem:[#allocation2 + $0x4a4] sm:$0xf]  ;;  %v2943_v52 = vor.u32 %v3824_v41, %v2940_v44 }
  0x56   :  { %1381 = vmatpush.bf16.msrb.mxu0 %v3115_v20  ;;  %1395 = vmatpush.bf16.msrb.mxu1 %v3243_v23  ;;  %v3196_v49 = vld [vmem:[#allocation2 + $0x4b0] sm:$0xf0]  ;;  %v3924_v50 = vld [vmem:[#allocation2 + $0x5c4] sm:$0xf]  ;;  %v3071_v53 = vor.u32 %v3856_v45, %v3068_v46 }
  0x57   :  { %v3340_v51 = vld [vmem:[#allocation2 + $0x5d0] sm:$0xf0]  ;;  %v3820_v54 = vld [vmem:[#allocation2 + $0x284] sm:$0xf]  ;;  %v3199_v55 = vor.u32 %v3888_v48, %v3196_v49 }
  0x58   :  { %1435 = vmatpush.bf16.msra.mxu2 %v2767_v11  ;;  %v2924_v56 = vld [vmem:[#allocation2 + $0x290] sm:$0xf0]  ;;  %v3852_v60 = vld [vmem:[#allocation2 + $0x384] sm:$0xf]  ;;  %v3343_v62 = vor.u32 %v3924_v50, %v3340_v51 }
  0x59   :  { %1423 = vmatpush.bf16.msrb.mxu3 %v2607_v24  ;;  %1382 = vmatmul.bf16.vlgmr.msrb.gmra.mxu0 %v4278_v58  ;;  %v3052_v61 = vld [vmem:[#allocation2 + $0x390] sm:$0xf0]  ;;  %v3884_v63 = vld [vmem:[#allocation2 + $0x484] sm:$0xf]  ;;  %v2927_v3 = vor.u32 %v3820_v54, %v2924_v56  ;;  %v2722_v54 = vld [vmem:[#allocation2 + $0xe8] sm:$0xf] }
  0x5a   :  { %1444 = vmatpush.bf16.msra.mxu0 %v2975_v25  ;;  %1458 = vmatpush.bf16.msra.mxu1 %v3103_v26  ;;  %v3180_v0 = vld [vmem:[#allocation2 + $0x490] sm:$0xf0]  ;;  %v3920_v1 = vld [vmem:[#allocation2 + $0x5a4] sm:$0xf]  ;;  %v3055_v4 = vor.u32 %v3852_v60, %v3052_v61  ;;  %v2850_v60 = vld [vmem:[#allocation2 + $0x1e8] sm:$0xf] }
  0x5b   :  { %1396 = vmatmul.bf16.vlgmr.msrb.gmra.mxu1 %v4280_v59  ;;  %v3324_v2 = vld [vmem:[#allocation2 + $0x5b0] sm:$0xf0]  ;;  %v3816_v5 = vld [vmem:[#allocation2 + $0x264] sm:$0xf]  ;;  %v3183_v6 = vor.u32 %v3884_v63, %v3180_v0  ;;  %v3803_v61 = vld [vmem:[#allocation2 + $0x1f4] sm:$0xf0] }
  0x5c   :  { %1436 = vmatpush.bf16.msra.mxu2 %v2751_v29  ;;  %1424 = vmatmul.bf16.vlgmr.msrb.gmra.mxu3 %v4268_v15  ;;  %v2908_v7 = vld [vmem:[#allocation2 + $0x270] sm:$0xf0]  ;;  %v3848_v8 = vld [vmem:[#allocation2 + $0x364] sm:$0xf]  ;;  %v3327_v10 = vor.u32 %v3920_v1, %v3324_v2 }
  0x5d   :  { %1472 = vmatpush.bf16.msra.mxu3 %v3231_v30  ;;  %v3036_v9 = vld [vmem:[#allocation2 + $0x370] sm:$0xf0]  ;;  %v3880_v11 = vld [vmem:[#allocation2 + $0x464] sm:$0xf]  ;;  %v2911_v19 = vor.u32 %v3816_v5, %v2908_v7  ;;  %v2978_v5 = vld [vmem:[#allocation2 + $0x2e8] sm:$0xf]  ;;  %v2851_v7 = vor.u32 %v3803_v61, %v2850_v60 }
  0x5e   :  { %1445 = vmatpush.bf16.msra.mxu0 %v2959_v39  ;;  %1459 = vmatpush.bf16.msra.mxu1 %v3087_v40  ;;  %v3164_v12 = vld [vmem:[#allocation2 + $0x470] sm:$0xf0]  ;;  %v3916_v16 = vld [vmem:[#allocation2 + $0x584] sm:$0xf]  ;;  %v3039_v20 = vor.u32 %v3848_v8, %v3036_v9  ;;  %v3835_v8 = vld [vmem:[#allocation2 + $0x2f4] sm:$0xf0] }
  0x5f   :  { %v3308_v17 = vld [vmem:[#allocation2 + $0x590] sm:$0xf0]  ;;  %v3812_v21 = vld [vmem:[#allocation2 + $0x244] sm:$0xf]  ;;  %v3167_v22 = vor.u32 %v3880_v11, %v3164_v12  ;;  %v2706_v9 = vld [vmem:[#allocation2 + $0xc8] sm:$0xf] }
  0x60   :  { %1437 = vmatpush.bf16.msra.mxu2 %v2735_v42  ;;  %v2892_v23 = vld [vmem:[#allocation2 + $0x250] sm:$0xf0]  ;;  %v3844_v24 = vld [vmem:[#allocation2 + $0x344] sm:$0xf]  ;;  %v3311_v26 = vor.u32 %v3916_v16, %v3308_v17  ;;  %v2834_v12 = vld [vmem:[#allocation2 + $0x1c8] sm:$0xf] }
  0x61   :  { %1473 = vmatpush.bf16.msra.mxu3 %v3215_v43  ;;  %v3020_v25 = vld [vmem:[#allocation2 + $0x350] sm:$0xf0]  ;;  %v3876_v27 = vld [vmem:[#allocation2 + $0x444] sm:$0xf]  ;;  %v2895_v31 = vor.u32 %v3812_v21, %v2892_v23  ;;  %v3799_v16 = vld [vmem:[#allocation2 + $0x1d4] sm:$0xf0]  ;;  %v2979_v21 = vor.u32 %v3835_v8, %v2978_v5 }
  0x62   :  { %1446 = vmatpush.bf16.msra.mxu0 %v2943_v52  ;;  %1460 = vmatpush.bf16.msra.mxu1 %v3071_v53  ;;  %v3148_v28 = vld [vmem:[#allocation2 + $0x450] sm:$0xf0]  ;;  %v3912_v29 = vld [vmem:[#allocation2 + $0x564] sm:$0xf]  ;;  %v3023_v32 = vor.u32 %v3844_v24, %v3020_v25  ;;  %v2835_v24 = vor.u32 %v3799_v16, %v2834_v12  ;;  %v2962_v25 = vld [vmem:[#allocation2 + $0x2c8] sm:$0xf] }
  0x63   :  { %1438 = vmatmul.bf16.vlgmr.msra.gmra.mxu2 %v4272_v18  ;;  %v3292_v30 = vld [vmem:[#allocation2 + $0x570] sm:$0xf0]  ;;  %v3808_v33 = vld [vmem:[#allocation2 + $0x224] sm:$0xf]  ;;  %v3151_v34 = vor.u32 %v3876_v27, %v3148_v28  ;;  %v2690_v27 = vld [vmem:[#allocation2 + $0xa8] sm:$0xf] }
  0x64   :  { %1486 = vmatpush.bf16.msrb.mxu2 %v3359_v47  ;;  %v2876_v35 = vld [vmem:[#allocation2 + $0x230] sm:$0xf0]  ;;  %v3840_v36 = vld [vmem:[#allocation2 + $0x324] sm:$0xf]  ;;  %v3295_v38 = vor.u32 %v3912_v29, %v3292_v30  ;;  %v3763_v29 = vld [vmem:[#allocation2 + $0xb4] sm:$0xf0] }
  0x65   :  { %1474 = vmatpush.bf16.msra.mxu3 %v3199_v55  ;;  %v3004_v37 = vld [vmem:[#allocation2 + $0x330] sm:$0xf0]  ;;  %v3872_v39 = vld [vmem:[#allocation2 + $0x424] sm:$0xf]  ;;  %v2879_v43 = vor.u32 %v3808_v33, %v2876_v35  ;;  %v3771_v55 = vld [vmem:[#allocation2 + $0xf4] sm:$0xf0]  ;;  %v2691_v35 = vor.u32 %v3763_v29, %v2690_v27 }
  0x66   :  { %1447 = vmatpush.bf16.msra.mxu0 %v2927_v3  ;;  %1461 = vmatpush.bf16.msra.mxu1 %v3055_v4  ;;  %v3132_v40 = vld [vmem:[#allocation2 + $0x430] sm:$0xf0]  ;;  %v3908_v41 = vld [vmem:[#allocation2 + $0x544] sm:$0xf]  ;;  %v3007_v44 = vor.u32 %v3840_v36, %v3004_v37  ;;  %v2723_v1 = vor.u32 %v3771_v55, %v2722_v54  ;;  %v2818_v30 = vld [vmem:[#allocation2 + $0x1a8] sm:$0xf] }
  0x67   :  { %v3276_v42 = vld [vmem:[#allocation2 + $0x550] sm:$0xf0]  ;;  %v3804_v45 = vld [vmem:[#allocation2 + $0x204] sm:$0xf]  ;;  %v3135_v47 = vor.u32 %v3872_v39, %v3132_v40  ;;  %v3863_v33 = vld [vmem:[#allocation2 + $0x3d4] sm:$0xf0] }
  0x68   :  { %1487 = vmatpush.bf16.msrb.mxu2 %v3343_v62  ;;  %v2860_v46 = vld [vmem:[#allocation2 + $0x210] sm:$0xf0]  ;;  %v3904_v48 = vld [vmem:[#allocation2 + $0x524] sm:$0xf]  ;;  %v3279_v52 = vor.u32 %v3908_v41, %v3276_v42  ;;  %v2946_v37 = vld [vmem:[#allocation2 + $0x2a8] sm:$0xf] }
  0x69   :  { %1475 = vmatpush.bf16.msra.mxu3 %v3183_v6  ;;  %v3836_v49 = vld [vmem:[#allocation2 + $0x304] sm:$0xf]  ;;  %v2988_v50 = vld [vmem:[#allocation2 + $0x310] sm:$0xf0]  ;;  %v2863_v62 = vor.u32 %v3804_v45, %v2860_v46  ;;  %v2674_v39 = vld [vmem:[#allocation2 + $0x88] sm:$0xf] }
  0x6a   :  { %1448 = vmatpush.bf16.msra.mxu0 %v2911_v19  ;;  %1462 = vmatpush.bf16.msra.mxu1 %v3039_v20  ;;  %v3868_v51 = vld [vmem:[#allocation2 + $0x404] sm:$0xf]  ;;  %v3116_v53 = vld [vmem:[#allocation2 + $0x410] sm:$0xf0]  ;;  %v2991_v63 = vor.u32 %v3836_v49, %v2988_v50  ;;  %v3106_v19 = vld [vmem:[#allocation2 + $0x3e8] sm:$0xf] }
  0x6b   :  { %v3260_v56 = vld [vmem:[#allocation2 + $0x530] sm:$0xf0]  ;;  %v3119_v0 = vor.u32 %v3868_v51, %v3116_v53  ;;  %v3900_v2 = vld [vmem:[#allocation2 + $0x504] sm:$0xf]  ;;  %v3867_v20 = vld [vmem:[#allocation2 + $0x3f4] sm:$0xf0] }
  0x6c   :  { %1488 = vmatpush.bf16.msrb.mxu2 %v3327_v10  ;;  %v3932_v3 = vld [vmem:[#allocation2 + $0x604] sm:$0xf]  ;;  %v3372_v4 = vld [vmem:[#allocation2 + $0x610] sm:$0xf0]  ;;  %v3263_v6 = vor.u32 %v3904_v48, %v3260_v56  ;;  %v3767_v10 = vld [vmem:[#allocation2 + $0xd4] sm:$0xf0]  ;;  %v3107_v28 = vor.u32 %v3867_v20, %v3106_v19 }
  0x6d   :  { %1476 = vmatpush.bf16.msra.mxu3 %v3167_v22  ;;  %v3244_v11 = vld [vmem:[#allocation2 + $0x510] sm:$0xf0]  ;;  %v3375_v17 = vor.u32 %v3932_v3, %v3372_v4  ;;  %v2707_v22 = vor.u32 %v3767_v10, %v2706_v9  ;;  %v3759_v41 = vld [vmem:[#allocation2 + $0x94] sm:$0xf0]  ;;  %v2802_v42 = vld [vmem:[#allocation2 + $0x188] sm:$0xf] }
  0x6e   :  { %1449 = vmatpush.bf16.msra.mxu0 %v2895_v31  ;;  %1463 = vmatpush.bf16.msra.mxu1 %v3023_v32  ;;  %v3247_v23 = vor.u32 %v3900_v2, %v3244_v11  ;;  %v3795_v31 = vld [vmem:[#allocation2 + $0x1b4] sm:$0xf0]  ;;  %v3090_v32 = vld [vmem:[#allocation2 + $0x3c8] sm:$0xf] }
  0x6f   :  { %v2819_v36 = vor.u32 %v3795_v31, %v2818_v30  ;;  %v3091_v40 = vor.u32 %v3863_v33, %v3090_v32  ;;  %v3859_v45 = vld [vmem:[#allocation2 + $0x3b4] sm:$0xf0]  ;;  %v2930_v49 = vld [vmem:[#allocation2 + $0x288] sm:$0xf] }
  0x70   :  { %1489 = vmatpush.bf16.msrb.mxu2 %v3311_v26  ;;  %v3831_v26 = vld [vmem:[#allocation2 + $0x2d4] sm:$0xf0]  ;;  %v2658_v51 = vld [vmem:[#allocation2 + $0x68] sm:$0xf] }
  0x71   :  { %1477 = vmatpush.bf16.msra.mxu3 %v3151_v34  ;;  %v2963_v34 = vor.u32 %v3831_v26, %v2962_v25  ;;  %v3823_v50 = vld [vmem:[#allocation2 + $0x294] sm:$0xf0]  ;;  %v2786_v54 = vld [vmem:[#allocation2 + $0x168] sm:$0xf] }
  0x72   :  { %1450 = vmatpush.bf16.msra.mxu0 %v2879_v43  ;;  %1464 = vmatpush.bf16.msra.mxu1 %v3007_v44  ;;  %v3791_v43 = vld [vmem:[#allocation2 + $0x194] sm:$0xf0]  ;;  %v3074_v44 = vld [vmem:[#allocation2 + $0x3a8] sm:$0xf]  ;;  %v2931_v61 = vor.u32 %v3823_v50, %v2930_v49 }
  0x73   :  { %v2803_v48 = vor.u32 %v3791_v43, %v2802_v42  ;;  %v3755_v53 = vld [vmem:[#allocation2 + $0x74] sm:$0xf0]  ;;  %v3058_v56 = vld [vmem:[#allocation2 + $0x388] sm:$0xf] }
  0x74   :  { %1490 = vmatpush.bf16.msrb.mxu2 %v3295_v38  ;;  %v3827_v38 = vld [vmem:[#allocation2 + $0x2b4] sm:$0xf0]  ;;  %v2642_v2 = vld [vmem:[#allocation2 + $0x48] sm:$0xf] }
  0x75   :  { %1478 = vmatpush.bf16.msra.mxu3 %v3135_v47  ;;  %v2947_v46 = vor.u32 %v3827_v38, %v2946_v37  ;;  %v2675_v47 = vor.u32 %v3759_v41, %v2674_v39  ;;  %v3787_v55 = vld [vmem:[#allocation2 + $0x174] sm:$0xf0]  ;;  %v2770_v5 = vld [vmem:[#allocation2 + $0x148] sm:$0xf] }
  0x76   :  { %1451 = vmatpush.bf16.msra.mxu0 %v2863_v62  ;;  %1465 = vmatpush.bf16.msra.mxu1 %v2991_v63  ;;  %v3855_v60 = vld [vmem:[#allocation2 + $0x394] sm:$0xf0]  ;;  %v2659_v62 = vor.u32 %v3755_v53, %v2658_v51  ;;  %v2787_v63 = vor.u32 %v3787_v55, %v2786_v54  ;;  %v2898_v12 = vld [vmem:[#allocation2 + $0x248] sm:$0xf]  ;;  %v3769_v53 = vld [vmem:[#allocation2 + $0xec] sm:$0xf] }
  0x77   :  { %v3059_v3 = vor.u32 %v3855_v60, %v3058_v56  ;;  %v3751_v4 = vld [vmem:[#allocation2 + $0x54] sm:$0xf0]  ;;  %v2882_v26 = vld [vmem:[#allocation2 + $0x228] sm:$0xf]  ;;  %v2724_v60 = vld [vmem:[#allocation2 + $0xf8] sm:$0xf0] }
  0x78   :  { %1491 = vmatpush.bf16.msrb.mxu2 %v3279_v52  ;;  %v3075_v52 = vor.u32 %v3859_v45, %v3074_v44  ;;  %v3851_v8 = vld [vmem:[#allocation2 + $0x374] sm:$0xf0]  ;;  %v2643_v10 = vor.u32 %v3751_v4, %v2642_v2  ;;  %v3010_v30 = vld [vmem:[#allocation2 + $0x328] sm:$0xf]  ;;  %v3801_v2 = vld [vmem:[#allocation2 + $0x1ec] sm:$0xf]  ;;  %v2727_v4 = vor.u32 %v3769_v53, %v2724_v60 }
  0x79   :  { %1479 = vmatpush.bf16.msra.mxu3 %v3119_v0  ;;  %1452 = vmatmul.bf16.vlgmr.msra.gmra.mxu0 %v4264_v13  ;;  %v2914_v0 = vld [vmem:[#allocation2 + $0x268] sm:$0xf]  ;;  %v3815_v16 = vld [vmem:[#allocation2 + $0x254] sm:$0xf0] }
  0x7a   :  { %1514 = vmatpush.bf16.msrb.mxu1 %v2723_v1  ;;  %1507 = vmatpush.bf16.msrb.mxu0 %v3375_v17  ;;  %v3819_v1 = vld [vmem:[#allocation2 + $0x274] sm:$0xf0]  ;;  %v2626_v17 = vld [vmem:[#allocation2 + $0x28] sm:$0xf]  ;;  %v2899_v25 = vor.u32 %v3815_v16, %v2898_v12 }
  0x7b   :  { %1466 = vmatmul.bf16.vlgmr.msra.gmra.mxu1 %v4266_v14  ;;  %v2915_v9 = vor.u32 %v3819_v1, %v2914_v0  ;;  %v3747_v20 = vld [vmem:[#allocation2 + $0x34] sm:$0xf0]  ;;  %v2610_v31 = vld [vmem:[#allocation2 + $0x8] sm:$0xf] }
  0x7c   :  { %1492 = vmatpush.bf16.msrb.mxu2 %v3263_v6  ;;  %1480 = vmatmul.bf16.vlgmr.msra.gmra.mxu3 %v4278_v58  ;;  %v3783_v6 = vld [vmem:[#allocation2 + $0x154] sm:$0xf0]  ;;  %v2627_v27 = vor.u32 %v3747_v20, %v2626_v17  ;;  %v3234_v37 = vld [vmem:[#allocation2 + $0x4e8] sm:$0xf]  ;;  %v3797_v17 = vld [vmem:[#allocation2 + $0x1cc] sm:$0xf] }
  0x7d   :  { %1528 = vmatpush.bf16.msrb.mxu3 %v2851_v7  ;;  %v3042_v7 = vld [vmem:[#allocation2 + $0x368] sm:$0xf]  ;;  %v2771_v11 = vor.u32 %v3783_v6, %v2770_v5  ;;  %v3811_v29 = vld [vmem:[#allocation2 + $0x234] sm:$0xf0]  ;;  %v3765_v6 = vld [vmem:[#allocation2 + $0xcc] sm:$0xf] }
  0x7e   :  { %1542 = vmatpush.bf16.msra.mxu0 %v2979_v21  ;;  %1515 = vmatpush.bf16.msrb.mxu1 %v2707_v22  ;;  %v3043_v19 = vor.u32 %v3851_v8, %v3042_v7  ;;  %v2754_v21 = vld [vmem:[#allocation2 + $0x128] sm:$0xf]  ;;  %v3779_v22 = vld [vmem:[#allocation2 + $0x134] sm:$0xf0]  ;;  %v2883_v39 = vor.u32 %v3811_v29, %v2882_v26 }
  0x7f   :  { %v3743_v33 = vld [vmem:[#allocation2 + $0x14] sm:$0xf0]  ;;  %v2866_v44 = vld [vmem:[#allocation2 + $0x208] sm:$0xf] }
  0x80   :  { %1493 = vmatpush.bf16.msrb.mxu2 %v3247_v23  ;;  %v3026_v23 = vld [vmem:[#allocation2 + $0x348] sm:$0xf]  ;;  %v3899_v38 = vld [vmem:[#allocation2 + $0x4f4] sm:$0xf0]  ;;  %v2611_v42 = vor.u32 %v3743_v33, %v2610_v31  ;;  %v2820_v31 = vld [vmem:[#allocation2 + $0x1b8] sm:$0xf0] }
  0x81   :  { %1529 = vmatpush.bf16.msrb.mxu3 %v2835_v24  ;;  %v3847_v24 = vld [vmem:[#allocation2 + $0x354] sm:$0xf0]  ;;  %v3378_v50 = vld [vmem:[#allocation2 + $0x608] sm:$0xf] }
  0x82   :  { %1543 = vmatpush.bf16.msra.mxu0 %v2963_v34  ;;  %1516 = vmatpush.bf16.msrb.mxu1 %v2691_v35  ;;  %v3027_v32 = vor.u32 %v3847_v24, %v3026_v23  ;;  %v2738_v34 = vld [vmem:[#allocation2 + $0x108] sm:$0xf]  ;;  %v3775_v35 = vld [vmem:[#allocation2 + $0x114] sm:$0xf0] }
  0x83   :  { %1494 = vmatmul.bf16.vlgmr.msrb.gmra.mxu2 %v4280_v59  ;;  %v3931_v41 = vld [vmem:[#allocation2 + $0x5f4] sm:$0xf0]  ;;  %v2739_v43 = vor.u32 %v3775_v35, %v2738_v34  ;;  %v3218_v54 = vld [vmem:[#allocation2 + $0x4c8] sm:$0xf]  ;;  %v3757_v34 = vld [vmem:[#allocation2 + $0x8c] sm:$0xf] }
  0x84   :  { %1556 = vmatpush.bf16.msra.mxu2 %v3107_v28  ;;  %v2755_v28 = vor.u32 %v3779_v22, %v2754_v21  ;;  %v3807_v45 = vld [vmem:[#allocation2 + $0x214] sm:$0xf0]  ;;  %v3202_v7 = vld [vmem:[#allocation2 + $0x4a8] sm:$0xf]  ;;  %v3761_v22 = vld [vmem:[#allocation2 + $0xac] sm:$0xf] }
  0x85   :  { %1530 = vmatpush.bf16.msrb.mxu3 %v2819_v36  ;;  %v3843_v36 = vld [vmem:[#allocation2 + $0x334] sm:$0xf0]  ;;  %v2867_v56 = vor.u32 %v3807_v45, %v2866_v44  ;;  %v3186_v23 = vld [vmem:[#allocation2 + $0x488] sm:$0xf] }
  0x86   :  { %1544 = vmatpush.bf16.msra.mxu0 %v2947_v46  ;;  %1517 = vmatpush.bf16.msrb.mxu1 %v2675_v47  ;;  %v2994_v46 = vld [vmem:[#allocation2 + $0x308] sm:$0xf]  ;;  %v3011_v47 = vor.u32 %v3843_v36, %v3010_v30  ;;  %v3839_v49 = vld [vmem:[#allocation2 + $0x314] sm:$0xf0]  ;;  %v3793_v30 = vld [vmem:[#allocation2 + $0x1ac] sm:$0xf] }
  0x87   :  { %v3935_v51 = vld [vmem:[#allocation2 + $0x614] sm:$0xf0]  ;;  %v2995_v0 = vor.u32 %v3839_v49, %v2994_v46  ;;  %v3314_v26 = vld [vmem:[#allocation2 + $0x588] sm:$0xf]  ;;  %v3753_v46 = vld [vmem:[#allocation2 + $0x6c] sm:$0xf] }
  0x88   :  { %1557 = vmatpush.bf16.msra.mxu2 %v3091_v40  ;;  %v3362_v40 = vld [vmem:[#allocation2 + $0x5e8] sm:$0xf]  ;;  %v3895_v55 = vld [vmem:[#allocation2 + $0x4d4] sm:$0xf0]  ;;  %v2660_v49 = vld [vmem:[#allocation2 + $0x78] sm:$0xf0] }
  0x89   :  { %1531 = vmatpush.bf16.msrb.mxu3 %v2803_v48  ;;  %3385 = vmatmul.msk.bf16.vlgmr.msrb.gmra.mxu0 %vm1315_vm0, %v4276_v57  ;;  %v3235_v48 = vor.u32 %v3899_v38, %v3234_v37  ;;  %v3219_v1 = vor.u32 %v3895_v55, %v3218_v54  ;;  %v3891_v8 = vld [vmem:[#allocation2 + $0x4b4] sm:$0xf0]  ;;  %v3170_v35 = vld [vmem:[#allocation2 + $0x468] sm:$0xf]  ;;  %v2676_v37 = vld [vmem:[#allocation2 + $0x98] sm:$0xf0] }
  0x8a   :  { %1545 = vmatpush.bf16.msra.mxu0 %v2931_v61  ;;  %1518 = vmatpush.bf16.msrb.mxu1 %v2659_v62  ;;  %v3346_v61 = vld [vmem:[#allocation2 + $0x5c8] sm:$0xf]  ;;  %v3927_v62 = vld [vmem:[#allocation2 + $0x5d4] sm:$0xf0]  ;;  %v3203_v16 = vor.u32 %v3891_v8, %v3202_v7  ;;  %v2679_v44 = vor.u32 %v3757_v34, %v2676_v37  ;;  %v3785_v54 = vld [vmem:[#allocation2 + $0x16c] sm:$0xf] }
  0x8b   :  { %v3347_v5 = vor.u32 %v3927_v62, %v3346_v61  ;;  %v3887_v24 = vld [vmem:[#allocation2 + $0x494] sm:$0xf0]  ;;  %v3298_v38 = vld [vmem:[#allocation2 + $0x568] sm:$0xf]  ;;  %v2788_v55 = vld [vmem:[#allocation2 + $0x178] sm:$0xf0] }
  0x8c   :  { %1558 = vmatpush.bf16.msra.mxu2 %v3075_v52  ;;  %v3363_v52 = vor.u32 %v3931_v41, %v3362_v40  ;;  %v3187_v29 = vor.u32 %v3887_v24, %v3186_v23  ;;  %v3883_v36 = vld [vmem:[#allocation2 + $0x474] sm:$0xf0]  ;;  %v2823_v40 = vor.u32 %v3793_v30, %v2820_v31  ;;  %v3749_v61 = vld [vmem:[#allocation2 + $0x4c] sm:$0xf]  ;;  %v3138_v62 = vld [vmem:[#allocation2 + $0x428] sm:$0xf] }
  0x8d   :  { %1532 = vmatpush.bf16.msrb.mxu3 %v2787_v63  ;;  %v3379_v63 = vor.u32 %v3935_v51, %v3378_v50  ;;  %v3171_v41 = vor.u32 %v3883_v36, %v3170_v35  ;;  %v3282_v50 = vld [vmem:[#allocation2 + $0x548] sm:$0xf]  ;;  %v3911_v51 = vld [vmem:[#allocation2 + $0x554] sm:$0xf0]  ;;  %v3745_v7 = vld [vmem:[#allocation2 + $0x2c] sm:$0xf] }
  0x8e   :  { %1546 = vmatpush.bf16.msra.mxu0 %v2915_v9  ;;  %1519 = vmatpush.bf16.msrb.mxu1 %v2643_v10  ;;  %v2708_v9 = vld [vmem:[#allocation2 + $0xd8] sm:$0xf0]  ;;  %v3330_v10 = vld [vmem:[#allocation2 + $0x5a8] sm:$0xf]  ;;  %v3283_v60 = vor.u32 %v3911_v51, %v3282_v50  ;;  %v3829_v36 = vld [vmem:[#allocation2 + $0x2cc] sm:$0xf] }
  0x8f   :  { %v2711_v20 = vor.u32 %v3765_v6, %v2708_v9  ;;  %v2772_v6 = vld [vmem:[#allocation2 + $0x158] sm:$0xf0]  ;;  %v3825_v51 = vld [vmem:[#allocation2 + $0x2ac] sm:$0xf] }
  0x90   :  { %1559 = vmatpush.bf16.msra.mxu2 %v3059_v3  ;;  %v2852_v3 = vld [vmem:[#allocation2 + $0x1f8] sm:$0xf0] }
  0x91   :  { %1533 = vmatpush.bf16.msrb.mxu3 %v2771_v11  ;;  %v3923_v11 = vld [vmem:[#allocation2 + $0x5b4] sm:$0xf0]  ;;  %v2855_v12 = vor.u32 %v3801_v2, %v2852_v3  ;;  %v2791_v3 = vor.u32 %v3785_v54, %v2788_v55  ;;  %v3108_v23 = vld [vmem:[#allocation2 + $0x3f8] sm:$0xf0]  ;;  %v3857_v54 = vld [vmem:[#allocation2 + $0x3ac] sm:$0xf] }
  0x92   :  { %1547 = vmatpush.bf16.msra.mxu0 %v2899_v25  ;;  %1520 = vmatpush.bf16.msrb.mxu1 %v2627_v27  ;;  %v3331_v21 = vor.u32 %v3923_v11, %v3330_v10  ;;  %v2692_v25 = vld [vmem:[#allocation2 + $0xb8] sm:$0xf0]  ;;  %v3919_v27 = vld [vmem:[#allocation2 + $0x594] sm:$0xf0]  ;;  %v3122_v11 = vld [vmem:[#allocation2 + $0x408] sm:$0xf] }
  0x93   :  { %v3315_v33 = vor.u32 %v3919_v27, %v3314_v26  ;;  %v3907_v2 = vld [vmem:[#allocation2 + $0x534] sm:$0xf0]  ;;  %v2628_v10 = vld [vmem:[#allocation2 + $0x38] sm:$0xf0] }
  0x94   :  { %1560 = vmatpush.bf16.msra.mxu2 %v3043_v19  ;;  %v2836_v19 = vld [vmem:[#allocation2 + $0x1d8] sm:$0xf0]  ;;  %v2631_v27 = vor.u32 %v3745_v7, %v2628_v10  ;;  %v3921_v7 = vld [vmem:[#allocation2 + $0x5ac] sm:$0xf] }
  0x95   :  { %1534 = vmatpush.bf16.msrb.mxu3 %v2755_v28  ;;  %v2839_v28 = vor.u32 %v3797_v17, %v2836_v19  ;;  %v3903_v17 = vld [vmem:[#allocation2 + $0x514] sm:$0xf0]  ;;  %v3833_v19 = vld [vmem:[#allocation2 + $0x2ec] sm:$0xf]  ;;  %v2756_v26 = vld [vmem:[#allocation2 + $0x138] sm:$0xf0] }
  0x96   :  { %1548 = vmatpush.bf16.msra.mxu0 %v2883_v39  ;;  %1521 = vmatpush.bf16.msrb.mxu1 %v2611_v42  ;;  %v3915_v39 = vld [vmem:[#allocation2 + $0x574] sm:$0xf0]  ;;  %v3789_v42 = vld [vmem:[#allocation2 + $0x18c] sm:$0xf]  ;;  %v3236_v34 = vld [vmem:[#allocation2 + $0x4f8] sm:$0xf0] }
  0x97   :  { %v3299_v45 = vor.u32 %v3915_v39, %v3298_v38  ;;  %v2964_v37 = vld [vmem:[#allocation2 + $0x2d8] sm:$0xf0]  ;;  %v3861_v38 = vld [vmem:[#allocation2 + $0x3cc] sm:$0xf] }
  0x98   :  { %1561 = vmatpush.bf16.msra.mxu2 %v3027_v32  ;;  %v2695_v32 = vor.u32 %v3761_v22, %v2692_v25  ;;  %v3865_v22 = vld [vmem:[#allocation2 + $0x3ec] sm:$0xf]  ;;  %v3092_v39 = vld [vmem:[#allocation2 + $0x3d8] sm:$0xf0] }
  0x99   :  { %1535 = vmatpush.bf16.msrb.mxu3 %v2739_v43  ;;  %1522 = vmatmul.bf16.vlgmr.msrb.gmra.mxu1 %v4268_v15  ;;  %v2804_v43 = vld [vmem:[#allocation2 + $0x198] sm:$0xf0]  ;;  %v3777_v25 = vld [vmem:[#allocation2 + $0x12c] sm:$0xf]  ;;  %v3111_v31 = vor.u32 %v3865_v22, %v3108_v23 }
  0x9a   :  { %1570 = vmatpush.bf16.msra.mxu1 %v3235_v48  ;;  %1549 = vmatpush.bf16.msra.mxu0 %v2867_v56  ;;  %v3879_v48 = vld [vmem:[#allocation2 + $0x454] sm:$0xf0]  ;;  %v2663_v56 = vor.u32 %v3753_v46, %v2660_v49  ;;  %v2759_v35 = vor.u32 %v3777_v25, %v2756_v26  ;;  %v2967_v46 = vor.u32 %v3829_v36, %v2964_v37  ;;  %v3220_v50 = vld [vmem:[#allocation2 + $0x4d8] sm:$0xf0]  ;;  %v3917_v23 = vld [vmem:[#allocation2 + $0x58c] sm:$0xf] }
  0x9b   :  { %v3076_v55 = vld [vmem:[#allocation2 + $0x3b8] sm:$0xf0]  ;;  %v3881_v26 = vld [vmem:[#allocation2 + $0x46c] sm:$0xf] }
  0x9c   :  { %1562 = vmatpush.bf16.msra.mxu2 %v3011_v47  ;;  %1536 = vmatmul.bf16.vlgmr.msrb.gmra.mxu3 %v4272_v18  ;;  %v3154_v47 = vld [vmem:[#allocation2 + $0x448] sm:$0xf]  ;;  %v3044_v22 = vld [vmem:[#allocation2 + $0x378] sm:$0xf0]  ;;  %v3877_v37 = vld [vmem:[#allocation2 + $0x44c] sm:$0xf] }
  0x9d   :  { %1584 = vmatpush.bf16.msra.mxu3 %v3363_v52  ;;  %1550 = vmatmul.bf16.vlgmr.msra.gmra.mxu0 %v4264_v13  ;;  %v2807_v52 = vor.u32 %v3789_v42, %v2804_v43  ;;  %v3155_v53 = vor.u32 %v3879_v48, %v3154_v47  ;;  %v3929_v43 = vld [vmem:[#allocation2 + $0x5ec] sm:$0xf]  ;;  %v3095_v48 = vor.u32 %v3861_v38, %v3092_v39  ;;  %v3156_v39 = vld [vmem:[#allocation2 + $0x458] sm:$0xf0] }
  0x9e   :  { %1605 = vmatpush.bf16.msrb.mxu0 %v3379_v63  ;;  %1571 = vmatpush.bf16.msra.mxu1 %v3219_v1  ;;  %v3875_v63 = vld [vmem:[#allocation2 + $0x434] sm:$0xf0]  ;;  %v3266_v1 = vld [vmem:[#allocation2 + $0x528] sm:$0xf]  ;;  %v3893_v47 = vld [vmem:[#allocation2 + $0x4cc] sm:$0xf] }
  0x9f   :  { %v3267_v9 = vor.u32 %v3907_v2, %v3266_v1  ;;  %v3204_v1 = vld [vmem:[#allocation2 + $0x4b8] sm:$0xf0]  ;;  %v3821_v2 = vld [vmem:[#allocation2 + $0x28c] sm:$0xf] }
  0xa0   :  { %1563 = vmatpush.bf16.msra.mxu2 %v2995_v0  ;;  %v2644_v0 = vld [vmem:[#allocation2 + $0x58] sm:$0xf0] }
  0xa1   :  { %1585 = vmatpush.bf16.msra.mxu3 %v3347_v5  ;;  %v3781_v5 = vld [vmem:[#allocation2 + $0x14c] sm:$0xf]  ;;  %v2647_v8 = vor.u32 %v3749_v61, %v2644_v0  ;;  %v3223_v61 = vor.u32 %v3893_v47, %v3220_v50  ;;  %v3079_v0 = vor.u32 %v3857_v54, %v3076_v55  ;;  %v3159_v47 = vor.u32 %v3877_v37, %v3156_v39  ;;  %v3140_v50 = vld [vmem:[#allocation2 + $0x438] sm:$0xf0] }
  0xa2   :  { %1626 = vmatpush.bf16.msra.mxu0 %v2855_v12  ;;  %1572 = vmatpush.bf16.msra.mxu1 %v3203_v16  ;;  %v3871_v12 = vld [vmem:[#allocation2 + $0x414] sm:$0xf0]  ;;  %v3250_v16 = vld [vmem:[#allocation2 + $0x508] sm:$0xf]  ;;  %v3837_v54 = vld [vmem:[#allocation2 + $0x30c] sm:$0xf] }
  0xa3   :  { %1564 = vmatmul.bf16.vlgmr.msra.gmra.mxu2 %v4266_v14  ;;  %v3123_v24 = vor.u32 %v3871_v12, %v3122_v11  ;;  %v3885_v11 = vld [vmem:[#allocation2 + $0x48c] sm:$0xf]  ;;  %v2996_v55 = vld [vmem:[#allocation2 + $0x318] sm:$0xf0] }
  0xa4   :  { %1612 = vmatpush.bf16.msrb.mxu2 %v2727_v4  ;;  %v3139_v4 = vor.u32 %v3875_v63, %v3138_v62  ;;  %v3889_v63 = vld [vmem:[#allocation2 + $0x4ac] sm:$0xf] }
  0xa5   :  { %1586 = vmatpush.bf16.msra.mxu3 %v3331_v21  ;;  %v2980_v21 = vld [vmem:[#allocation2 + $0x2f8] sm:$0xf0] }
  0xa6   :  { %1627 = vmatpush.bf16.msra.mxu0 %v2839_v28  ;;  %1573 = vmatpush.bf16.msra.mxu1 %v3187_v29  ;;  %v3251_v28 = vor.u32 %v3903_v17, %v3250_v16  ;;  %v3741_v29 = vld [vmem:[#allocation2 + $0xc] sm:$0xf]  ;;  %v2983_v30 = vor.u32 %v3833_v19, %v2980_v21  ;;  %v3188_v16 = vld [vmem:[#allocation2 + $0x498] sm:$0xf0] }
  0xa7   :  { %v3817_v17 = vld [vmem:[#allocation2 + $0x26c] sm:$0xf]  ;;  %v2916_v19 = vld [vmem:[#allocation2 + $0x278] sm:$0xf0] }
  0xa8   :  { %1613 = vmatpush.bf16.msrb.mxu2 %v2711_v20  ;;  %v2775_v20 = vor.u32 %v3781_v5, %v2772_v6  ;;  %v3853_v5 = vld [vmem:[#allocation2 + $0x38c] sm:$0xf]  ;;  %v3060_v6 = vld [vmem:[#allocation2 + $0x398] sm:$0xf0]  ;;  %v2919_v25 = vor.u32 %v3817_v17, %v2916_v19  ;;  %v3438_v19 = vld [vmem:[#allocation7 + $0x60] sm:$0xf] }
  0xa9   :  { %1587 = vmatpush.bf16.msra.mxu3 %v3315_v33  ;;  %v3897_v33 = vld [vmem:[#allocation2 + $0x4ec] sm:$0xf]  ;;  %v3063_v12 = vor.u32 %v3853_v5, %v3060_v6  ;;  %v2999_v5 = vor.u32 %v3837_v54, %v2996_v55  ;;  %v3252_v17 = vld [vmem:[#allocation2 + $0x518] sm:$0xf0] }
  0xaa   :  { %1628 = vmatpush.bf16.msra.mxu0 %v2823_v40  ;;  %1574 = vmatpush.bf16.msra.mxu1 %v3171_v41  ;;  %v3773_v40 = vld [vmem:[#allocation2 + $0x10c] sm:$0xf]  ;;  %v2740_v41 = vld [vmem:[#allocation2 + $0x118] sm:$0xf0] }
  0xab   :  { %v2743_v49 = vor.u32 %v3773_v40, %v2740_v41  ;;  %v3849_v21 = vld [vmem:[#allocation2 + $0x36c] sm:$0xf]  ;;  %v2884_v41 = vld [vmem:[#allocation2 + $0x238] sm:$0xf0] }
  0xac   :  { %1614 = vmatpush.bf16.msrb.mxu2 %v2695_v32  ;;  %v2612_v32 = vld [vmem:[#allocation2 + $0x18] sm:$0xf0]  ;;  %v3809_v40 = vld [vmem:[#allocation2 + $0x22c] sm:$0xf] }
  0xad   :  { %1588 = vmatpush.bf16.msra.mxu3 %v3299_v45  ;;  %3386 = vmatmul.msk.bf16.vlgmr.msrb.gmra.mxu0 %vm1315_vm0, %v4276_v57  ;;  %v2615_v42 = vor.u32 %v3741_v29, %v2612_v32  ;;  %v3239_v45 = vor.u32 %v3897_v33, %v3236_v34  ;;  %v3813_v29 = vld [vmem:[#allocation2 + $0x24c] sm:$0xf]  ;;  %v3300_v34 = vld [vmem:[#allocation2 + $0x578] sm:$0xf0] }
  0xae   :  { %1629 = vmatpush.bf16.msra.mxu0 %v2807_v52  ;;  %1575 = vmatpush.bf16.msra.mxu1 %v3155_v53  ;;  %v2948_v52 = vld [vmem:[#allocation2 + $0x2b8] sm:$0xf0]  ;;  %v3845_v32 = vld [vmem:[#allocation2 + $0x34c] sm:$0xf] }
  0xaf   :  { %v2951_v62 = vor.u32 %v3825_v51, %v2948_v52  ;;  %v3913_v33 = vld [vmem:[#allocation2 + $0x56c] sm:$0xf] }
  0xb0   :  { %1615 = vmatpush.bf16.msrb.mxu2 %v2679_v44  ;;  %v3364_v44 = vld [vmem:[#allocation2 + $0x5f8] sm:$0xf0]  ;;  %v3805_v51 = vld [vmem:[#allocation2 + $0x20c] sm:$0xf] }
  0xb1   :  { %1589 = vmatpush.bf16.msra.mxu3 %v3283_v60  ;;  %v3367_v53 = vor.u32 %v3929_v43, %v3364_v44  ;;  %v3348_v60 = vld [vmem:[#allocation2 + $0x5d8] sm:$0xf0]  ;;  %v3841_v43 = vld [vmem:[#allocation2 + $0x32c] sm:$0xf] }
  0xb2   :  { %1630 = vmatpush.bf16.msra.mxu0 %v2791_v3  ;;  %1576 = vmatpush.bf16.msra.mxu1 %v3139_v4  ;;  %v2932_v3 = vld [vmem:[#allocation2 + $0x298] sm:$0xf0]  ;;  %v3869_v6 = vld [vmem:[#allocation2 + $0x40c] sm:$0xf] }
  0xb3   :  { %v2935_v10 = vor.u32 %v3821_v2, %v2932_v3  ;;  %v3012_v44 = vld [vmem:[#allocation2 + $0x338] sm:$0xf0] }
  0xb4   :  { %1616 = vmatpush.bf16.msrb.mxu2 %v2663_v56  ;;  %v3925_v56 = vld [vmem:[#allocation2 + $0x5cc] sm:$0xf]  ;;  %v3015_v52 = vor.u32 %v3841_v43, %v3012_v44  ;;  %v3951_v2 = vld [vmem:[#allocation7 + $0x74] sm:$0xf0]  ;;  %v3478_v43 = vld [vmem:[#allocation7 + $0xb0] sm:$0xf] }
  0xb5   :  { %1590 = vmatpush.bf16.msra.mxu3 %v3267_v9  ;;  %v3351_v4 = vor.u32 %v3925_v56, %v3348_v60  ;;  %v3207_v9 = vor.u32 %v3889_v63, %v3204_v1  ;;  %v3905_v60 = vld [vmem:[#allocation2 + $0x52c] sm:$0xf]  ;;  %v3446_v1 = vld [vmem:[#allocation7 + $0x70] sm:$0xf] }
  0xb6   :  { %1631 = vmatpush.bf16.msra.mxu0 %v2775_v20  ;;  %1577 = vmatpush.bf16.msra.mxu1 %v3123_v24  ;;  %v3191_v24 = vor.u32 %v3885_v11, %v3188_v16  ;;  %v3447_v11 = vor.u32 %v3951_v2, %v3446_v1  ;;  %v3967_v16 = vld [vmem:[#allocation7 + $0xf4] sm:$0xf0] }
  0xb8   :  { %1617 = vmatpush.bf16.msrb.mxu2 %v2647_v8  ;;  %v3332_v8 = vld [vmem:[#allocation2 + $0x5b8] sm:$0xf0] }
  0xb9   :  { %1591 = vmatpush.bf16.msra.mxu3 %v3251_v28  ;;  %1578 = vmatmul.bf16.vlgmr.msra.gmra.mxu1 %v4278_v58  ;;  %v3335_v20 = vor.u32 %v3921_v7, %v3332_v8  ;;  %v3172_v28 = vld [vmem:[#allocation2 + $0x478] sm:$0xf0] }
  0xba   :  { %1640 = vmatpush.bf16.msrb.mxu1 %v2983_v30  ;;  %1632 = vmatpush.bf16.msra.mxu0 %v2759_v35  ;;  %v2900_v30 = vld [vmem:[#allocation2 + $0x258] sm:$0xf0]  ;;  %v3175_v35 = vor.u32 %v3881_v26, %v3172_v28 }
  0xbb   :  { %v2903_v36 = vor.u32 %v3813_v29, %v2900_v30  ;;  %v3124_v7 = vld [vmem:[#allocation2 + $0x418] sm:$0xf0] }
  0xbc   :  { %1618 = vmatpush.bf16.msrb.mxu2 %v2631_v27  ;;  %1592 = vmatmul.bf16.vlgmr.msra.gmra.mxu3 %v4280_v59  ;;  %v3047_v27 = vor.u32 %v3849_v21, %v3044_v22  ;;  %v3127_v21 = vor.u32 %v3869_v6, %v3124_v7  ;;  %v3953_v7 = vld [vmem:[#allocation7 + $0x84] sm:$0xf0] }
  0xbd   :  { %1654 = vmatpush.bf16.msrb.mxu3 %v3111_v31 }
  0xbe   :  { %1641 = vmatpush.bf16.msrb.mxu1 %v2967_v46  ;;  %1633 = vmatpush.bf16.msra.mxu0 %v2743_v49  ;;  %v3284_v46 = vld [vmem:[#allocation2 + $0x558] sm:$0xf0]  ;;  %v3873_v49 = vld [vmem:[#allocation2 + $0x42c] sm:$0xf] }
  0xbf   :  { %v3143_v3 = vor.u32 %v3873_v49, %v3140_v50  ;;  %v3941_v49 = vld [vmem:[#allocation7 + $0x24] sm:$0xf0]  ;;  %v3470_v50 = vld [vmem:[#allocation7 + $0xa0] sm:$0xf] }
  0xc0   :  { %1619 = vmatpush.bf16.msrb.mxu2 %v2615_v42  ;;  %v3303_v42 = vor.u32 %v3913_v33, %v3300_v34  ;;  %v3422_v34 = vld [vmem:[#allocation7 + $0x40] sm:$0xf] }
  0xc1   :  { %1655 = vmatpush.bf16.msrb.mxu3 %v3095_v48  ;;  %1634 = vmatmul.bf16.vlgmr.msra.gmra.mxu0 %v4272_v18  ;;  %v3028_v18 = vld [vmem:[#allocation2 + $0x358] sm:$0xf0]  ;;  %v2887_v48 = vor.u32 %v3809_v40, %v2884_v41  ;;  %v4306_v26 = vpop.f32.mrf.mxu0 }
  0xc2   :  { %1682 = vmatpush.bf16.msrb.mxu0 %v3367_v53  ;;  %1642 = vmatpush.bf16.msrb.mxu1 %v2951_v62  ;;  %v3031_v38 = vor.u32 %v3845_v32, %v3028_v18  ;;  %v2868_v53 = vld [vmem:[#allocation2 + $0x218] sm:$0xf0]  ;;  %v3494_v18 = vld [vmem:[#allocation7 + $0xd0] sm:$0xf] }
  0xc3   :  { %1620 = vmatmul.bf16.vlgmr.msrb.gmra.mxu2 %v4268_v15  ;;  %v3316_v15 = vld [vmem:[#allocation2 + $0x598] sm:$0xf0] }
  0xc4   :  { %1668 = vmatpush.bf16.msra.mxu2 %v3239_v45  ;;  %v3319_v31 = vor.u32 %v3917_v23, %v3316_v15  ;;  %v3909_v45 = vld [vmem:[#allocation2 + $0x54c] sm:$0xf]  ;;  %v3380_v62 = vld [vmem:[#allocation2 + $0x618] sm:$0xf0] }
  0xc5   :  { %1656 = vmatpush.bf16.msrb.mxu3 %v3079_v0  ;;  %v3287_v56 = vor.u32 %v3909_v45, %v3284_v46  ;;  %v3268_v0 = vld [vmem:[#allocation2 + $0x538] sm:$0xf0] }
  0xc6   :  { %1683 = vmatpush.bf16.msrb.mxu0 %v3351_v4  ;;  %1643 = vmatpush.bf16.msrb.mxu1 %v2935_v10  ;;  %v4304_v63 = vpop.f32.mrf.mxu2  ;;  %v2871_v4 = vor.u32 %v3805_v51, %v2868_v53  ;;  %v3901_v10 = vld [vmem:[#allocation2 + $0x50c] sm:$0xf]  ;;  %v4315_v30 = vpop.f32.mrf.mxu3  ;;  %v3947_v32 = vld [vmem:[#allocation7 + $0x54] sm:$0xf0] }
  0xc7   :  { %v3255_v23 = vor.u32 %v3901_v10, %v3252_v17  ;;  %v3959_v45 = vld [vmem:[#allocation7 + $0xb4] sm:$0xf0]  ;;  %v3957_v53 = vld [vmem:[#allocation7 + $0xa4] sm:$0xf0]  ;;  %v3448_v10 = vld [vmem:[#allocation7 + $0x78] sm:$0xf0] }
  0xc8   :  { %1669 = vmatpush.bf16.msra.mxu2 %v3223_v61  ;;  %v3933_v61 = vld [vmem:[#allocation2 + $0x60c] sm:$0xf]  ;;  %v3471_v54 = vor.u32 %v3957_v53, %v3470_v50  ;;  %v3416_v53 = vld [vmem:[#allocation7 + $0x38] sm:$0xf0] }
  0xc9   :  { %1657 = vmatpush.bf16.msrb.mxu3 %v3063_v12  ;;  %v3383_v8 = vor.u32 %v3933_v61, %v3380_v62  ;;  %v3510_v12 = vld [vmem:[#allocation7 + $0xf0] sm:$0xf]  ;;  %v4318_v39 = vpop.f32.mrf.mxu0  ;;  %v3939_v61 = vld [vmem:[#allocation7 + $0x14] sm:$0xf0] }
  0xca   :  { %1684 = vmatpush.bf16.msrb.mxu0 %v3335_v20  ;;  %1644 = vmatpush.bf16.msrb.mxu1 %v2919_v25  ;;  %v3949_v20 = vld [vmem:[#allocation7 + $0x64] sm:$0xf0]  ;;  %v3511_v22 = vor.u32 %v3967_v16, %v3510_v12  ;;  %v3462_v62 = vld [vmem:[#allocation7 + $0x90] sm:$0xf]  ;;  %v3512_v12 = vld [vmem:[#allocation7 + $0xf8] sm:$0xf0] }
  0xcb   :  { %v3439_v15 = vor.u32 %v3949_v20, %v3438_v19  ;;  %v3965_v25 = vld [vmem:[#allocation7 + $0xe4] sm:$0xf0] }
  0xcc   :  { %1670 = vmatpush.bf16.msra.mxu2 %v3207_v9  ;;  %v3271_v9 = vor.u32 %v3905_v60, %v3268_v0  ;;  %v3398_v60 = vld [vmem:[#allocation7 + $0x10] sm:$0xf]  ;;  %v3955_v0 = vld [vmem:[#allocation7 + $0x94] sm:$0xf0] }
  0xcd   :  { %1658 = vmatpush.bf16.msrb.mxu3 %v3047_v27  ;;  %v4310_v27 = vpop.f32.mrf.mxu1  ;;  %v3463_v2 = vor.u32 %v3955_v0, %v3462_v62 }
  0xce   :  { %1685 = vmatpush.bf16.msrb.mxu0 %v3319_v31  ;;  %1645 = vmatpush.bf16.msrb.mxu1 %v2903_v36  ;;  %v4312_v28 = vpop.f32.mrf.mxu2  ;;  %v3430_v31 = vld [vmem:[#allocation7 + $0x50] sm:$0xf]  ;;  %v3486_v36 = vld [vmem:[#allocation7 + $0xc0] sm:$0xf]  ;;  %v4324_v46 = vpop.f32.mrf.mxu3 }
  0xd0   :  { %1671 = vmatpush.bf16.msra.mxu2 %v3191_v24  ;;  %v3502_v24 = vld [vmem:[#allocation7 + $0xe0] sm:$0xf] }
  0xd1   :  { %1659 = vmatpush.bf16.msrb.mxu3 %v3031_v38  ;;  %v3503_v29 = vor.u32 %v3965_v25, %v3502_v24  ;;  %v3961_v38 = vld [vmem:[#allocation7 + $0xc4] sm:$0xf0]  ;;  %v3504_v25 = vld [vmem:[#allocation7 + $0xe8] sm:$0xf0] }
  0xd2   :  { %1686 = vmatpush.bf16.msrb.mxu0 %v3303_v42  ;;  %1646 = vmatpush.bf16.msrb.mxu1 %v2887_v48  ;;  %v3487_v40 = vor.u32 %v3961_v38, %v3486_v36  ;;  %v3943_v42 = vld [vmem:[#allocation7 + $0x34] sm:$0xf0]  ;;  %v3406_v48 = vld [vmem:[#allocation7 + $0x20] sm:$0xf] }
  0xd4   :  { %1672 = vmatpush.bf16.msra.mxu2 %v3175_v35  ;;  %v3945_v35 = vld [vmem:[#allocation7 + $0x44] sm:$0xf0] }
  0xd5   :  { %1660 = vmatpush.bf16.msrb.mxu3 %v3015_v52  ;;  %v3423_v37 = vor.u32 %v3945_v35, %v3422_v34  ;;  %v4322_v41 = vpop.f32.mrf.mxu1  ;;  %v3407_v52 = vor.u32 %v3941_v49, %v3406_v48  ;;  %v3496_v34 = vld [vmem:[#allocation7 + $0xd8] sm:$0xf0] }
  0xd6   :  { %1687 = vmatpush.bf16.msrb.mxu0 %v3287_v56  ;;  %1647 = vmatpush.bf16.msrb.mxu1 %v2871_v4  ;;  %v4328_v51 = vpop.f32.mrf.mxu0  ;;  %v3937_v4 = vld [vmem:[#allocation7 + $0x4] sm:$0xf0] }
  0xd8   :  { %1673 = vmatpush.bf16.msra.mxu2 %v3159_v47  ;;  %v3479_v47 = vor.u32 %v3959_v45, %v3478_v43  ;;  %v3424_v43 = vld [vmem:[#allocation7 + $0x48] sm:$0xf0] }
  0xd9   :  { %1661 = vmatpush.bf16.msrb.mxu3 %v2999_v5  ;;  %1648 = vmatmul.bf16.vlgmr.msrb.gmra.mxu1 %v4264_v13  ;;  %v3431_v13 = vor.u32 %v3947_v32, %v3430_v31  ;;  %v3454_v5 = vld [vmem:[#allocation7 + $0x80] sm:$0xf] }
  0xda   :  { %1703 = vmatpush.bf16.msra.mxu1 %v3383_v8  ;;  %1688 = vmatpush.bf16.msrb.mxu0 %v3271_v9  ;;  %v3950_v8 = vld [vmem:[#allocation7 + $0x74] sm:$0xf]  ;;  %v3455_v9 = vor.u32 %v3953_v7, %v3454_v5  ;;  %v3956_v5 = vld [vmem:[#allocation7 + $0xa4] sm:$0xf]  ;;  %v3472_v7 = vld [vmem:[#allocation7 + $0xa8] sm:$0xf0] }
  0xdb   :  { %v3451_v19 = vor.u32 %v3950_v8, %v3448_v10  ;;  %v1717_v10 = vld [vmem:[#allocation1] sm:$0xff] }
  0xdc   :  { %1674 = vmatpush.bf16.msra.mxu2 %v3143_v3  ;;  %1662 = vmatmul.bf16.vlgmr.msrb.gmra.mxu3 %v4266_v14  ;;  %v3963_v14 = vld [vmem:[#allocation7 + $0xd4] sm:$0xf0]  ;;  %v3390_v3 = vld [vmem:[#allocation7] sm:$0xf] }
  0xdd   :  { %2161 = vmatpush.bf16.msra.mxu3 %v3447_v11  ;;  %v3495_v33 = vor.u32 %v3963_v14, %v3494_v18  ;;  %v4330_v55 = vpop.f32.mrf.mxu1  ;;  %v3391_v6 = vor.u32 %v3937_v4, %v3390_v3  ;;  %v3966_v11 = vld [vmem:[#allocation7 + $0xf4] sm:$0xf]  ;;  %v3940_v3 = vld [vmem:[#allocation7 + $0x24] sm:$0xf]  ;;  %v3408_v4 = vld [vmem:[#allocation7 + $0x28] sm:$0xf0] }
  0xde   :  { %2175 = vmatpush.bf16.msrb.mxu1 %v3511_v22  ;;  %1689 = vmatpush.bf16.msrb.mxu0 %v3255_v23  ;;  %v4334_v16 = vpop.f32.mrf.mxu0  ;;  %v3515_v20 = vor.u32 %v3966_v11, %v3512_v12  ;;  %v3948_v22 = vld [vmem:[#allocation7 + $0x64] sm:$0xf]  ;;  %v3440_v23 = vld [vmem:[#allocation7 + $0x68] sm:$0xf0]  ;;  %v3946_v18 = vld [vmem:[#allocation7 + $0x54] sm:$0xf]  ;;  %v3475_v11 = vor.u32 %v3956_v5, %v3472_v7 }
  0xdf   :  { %v1425_v1 = vpop.f32.mrf.mxu3  ;;  %v3443_v24 = vor.u32 %v3948_v22, %v3440_v23  ;;  %v3962_v14 = vld [vmem:[#allocation7 + $0xd4] sm:$0xf]  ;;  %v3464_v23 = vld [vmem:[#allocation7 + $0x98] sm:$0xf0]  ;;  %v3981_v7 = vld [vmem:[#allocation7 + $0x164] sm:$0xf0] }
  0xe0   :  { %1675 = vmatpush.bf16.msra.mxu2 %v3127_v21  ;;  %v3499_v36 = vor.u32 %v3962_v14, %v3496_v34  ;;  %v3936_v14 = vld [vmem:[#allocation7 + $0x4] sm:$0xf] }
  0xe1   :  { %2162 = vmatpush.bf16.msra.mxu3 %v3439_v15  ;;  %1690 = vmatmul.bf16.vlgmr.msrb.gmra.mxu0 %v4280_v59  ;;  %v3414_v59 = vld [vmem:[#allocation7 + $0x30] sm:$0xf]  ;;  %v3964_v15 = vld [vmem:[#allocation7 + $0xe4] sm:$0xf] }
  0xe2   :  { %2176 = vmatpush.bf16.msrb.mxu1 %v3503_v29  ;;  %v3415_v44 = vor.u32 %v3943_v42, %v3414_v59  ;;  %v3507_v29 = vor.u32 %v3964_v15, %v3504_v25  ;;  %v3944_v42 = vld [vmem:[#allocation7 + $0x44] sm:$0xf] }
  0xe3   :  { %1676 = vmatmul.bf16.vlgmr.msra.gmra.mxu2 %v4278_v58  ;;  %v4320_v58 = vpop.f32.mrf.mxu2  ;;  %v3427_v45 = vor.u32 %v3944_v42, %v3424_v43 }
  0xe5   :  { %2163 = vmatpush.bf16.msra.mxu3 %v3431_v13  ;;  %v4336_v21 = vpop.f32.mrf.mxu1  ;;  %v3432_v13 = vld [vmem:[#allocation7 + $0x58] sm:$0xf0] }
  0xe6   :  { %2177 = vmatpush.bf16.msrb.mxu1 %v3495_v33  ;;  %v3435_v33 = vor.u32 %v3946_v18, %v3432_v13 }
  0xe7   :  { %v1427_v32 = vpop.f32.mrf.mxu3 }
  0xe9   :  { %2164 = vmatpush.bf16.msra.mxu3 %v3423_v37  ;;  %3387 = vmatmul.msk.bf16.vlgmr.msra.gmra.mxu1 %vm1315_vm0, %v4276_v57  ;;  %v3399_v57 = vor.u32 %v3939_v61, %v3398_v60  ;;  %v1342_v37 = vadd.f32 %v4310_v27, %v4306_v26  ;;  %v1344_v26 = vadd.f32 %v4322_v41, %v4318_v39  ;;  %v3480_v60 = vld [vmem:[#allocation7 + $0xb8] sm:$0xf0] }
  0xea   :  { %2178 = vmatpush.bf16.msrb.mxu1 %v3487_v40  ;;  %v3411_v41 = vor.u32 %v3940_v3, %v3408_v4  ;;  %v3983_v3 = vld [vmem:[#allocation7 + $0x174] sm:$0xf0]  ;;  %v3638_v4 = vld [vmem:[#allocation7 + $0x1f0] sm:$0xf] }
  0xeb   :  { %v4332_v56 = vpop.f32.mrf.mxu2  ;;  %v1356_v49 = vadd.f32 %v4304_v63, %v1342_v37  ;;  %v1358_v63 = vadd.f32 %v4312_v28, %v1344_v26 }
  0xed   :  { %2165 = vmatpush.bf16.msra.mxu3 %v3415_v44  ;;  %v3960_v44 = vld [vmem:[#allocation7 + $0xc4] sm:$0xf]  ;;  %v1372_v28 = vadd.f32 %v4324_v46, %v1358_v63  ;;  %v3574_v63 = vld [vmem:[#allocation7 + $0x170] sm:$0xf] }
  0xee   :  { %2179 = vmatpush.bf16.msrb.mxu1 %v3479_v47  ;;  %v3488_v47 = vld [vmem:[#allocation7 + $0xc8] sm:$0xf0]  ;;  %v3952_v46 = vld [vmem:[#allocation7 + $0x84] sm:$0xf]  ;;  %v3575_v5 = vor.u32 %v3983_v3, %v3574_v63 }
  0xef   :  { %v3491_v48 = vor.u32 %v3960_v44, %v3488_v47  ;;  %v1386_v25 = vadd.f32 %v4334_v16, %v1372_v28  ;;  %v3622_v28 = vld [vmem:[#allocation7 + $0x1d0] sm:$0xf] }
  0xf0   :  { %2189 = vmatpush.bf16.msrb.mxu2 %v3575_v5 }
  0xf1   :  { %2166 = vmatpush.bf16.msra.mxu3 %v3407_v52  ;;  %v3942_v52 = vld [vmem:[#allocation7 + $0x34] sm:$0xf]  ;;  %v1400_v37 = vadd.f32 %v4336_v21, %v1386_v25 }
  0xf2   :  { %2180 = vmatpush.bf16.msrb.mxu1 %v3471_v54  ;;  %v3958_v54 = vld [vmem:[#allocation7 + $0xb4] sm:$0xf]  ;;  %v3419_v27 = vor.u32 %v3942_v52, %v3416_v53 }
  0xf3   :  { %v1439_v17 = vpop.f32.mrf.mxu2  ;;  %v1414_v44 = vadd.f32 %v4332_v56, %v1400_v37  ;;  %v3534_v37 = vld [vmem:[#allocation7 + $0x120] sm:$0xf] }
  0xf4   :  { %v1440_v31 = vadd.f32 %v1439_v17, %v1425_v1  ;;  %v1370_v1 = vadd.f32 %v4315_v30, %v1356_v49  ;;  %v3938_v17 = vld [vmem:[#allocation7 + $0x14] sm:$0xf]  ;;  %v3400_v30 = vld [vmem:[#allocation7 + $0x18] sm:$0xf0] }
  0xf5   :  { %2167 = vmatpush.bf16.msra.mxu3 %v3399_v57  ;;  %v3483_v57 = vor.u32 %v3958_v54, %v3480_v60  ;;  %v3403_v22 = vor.u32 %v3938_v17, %v3400_v30  ;;  %v3558_v30 = vld [vmem:[#allocation7 + $0x150] sm:$0xf] }
  0xf6   :  { %2181 = vmatpush.bf16.msrb.mxu1 %v3463_v2  ;;  %v1453_v35 = vpop.f32.mrf.mxu0 }
  0xf7   :  { %v1454_v38 = vadd.f32 %v1453_v35, %v1440_v31 }
  0xf8   :  { %v1467_v59 = vpop.f32.mrf.mxu1 }
  0xf9   :  { %2168 = vmatpush.bf16.msra.mxu3 %v3391_v6  ;;  %v1468_v50 = vadd.f32 %v1467_v59, %v1454_v38  ;;  %v1384_v6 = vadd.f32 %v4328_v51, %v1370_v1 }
  0xfa   :  { %2182 = vmatpush.bf16.msrb.mxu1 %v3455_v9 }
  0xfb   :  { %v1441_v40 = vpop.f32.mrf.mxu2  ;;  %v1398_v51 = vadd.f32 %v4330_v55, %v1384_v6  ;;  %v3456_v55 = vld [vmem:[#allocation7 + $0x88] sm:$0xf0]  ;;  %v3999_v6 = vld [vmem:[#allocation7 + $0x1f4] sm:$0xf0] }
  0xfc   :  { %v1442_v61 = vadd.f32 %v1441_v40, %v1427_v32  ;;  %v1721_v32 = vpack.i.b16 %v1717_v10, %v1717_v10  ;;  %v3459_v16 = vor.u32 %v3952_v46, %v3456_v55  ;;  %v3997_v10 = vld [vmem:[#allocation7 + $0x1e4] sm:$0xf0]  ;;  %v3975_v46 = vld [vmem:[#allocation7 + $0x134] sm:$0xf0] }
  0xfd   :  { %2217 = vmatpush.bf16.msrb.mxu3 %v3451_v19  ;;  %v3954_v19 = vld [vmem:[#allocation7 + $0x94] sm:$0xf]  ;;  %v1412_v34 = vadd.f32 %v4320_v58, %v1398_v51  ;;  %v3550_v51 = vld [vmem:[#allocation7 + $0x140] sm:$0xf] }
  0xfe   :  { %2231 = vmatpush.bf16.msra.mxu1 %v3515_v20  ;;  %v1455_v0 = vpop.f32.mrf.mxu0  ;;  %v1718_v20 = vld [vmem:[#allocation1 + $0x9] sm:$0xff]  ;;  %v1723_v38 = vperm.slane %v1721_v32, 0 }
  0xff   :  { %v1481_v62 = vpop.f32.mrf.mxu3  ;;  %v1456_v39 = vadd.f32 %v1455_v0, %v1442_v61  ;;  %v1724_v13 = vpack.i.b16 %v1718_v20, %v1718_v20 }
 0x100   :  { %v1482_v2 = vadd.f32 %v1481_v62, %v1468_v50  ;;  %v1469_v9 = vpop.f32.mrf.mxu1 }
 0x101   :  { %2218 = vmatpush.bf16.msrb.mxu3 %v3443_v24  ;;  %v1470_v15 = vadd.f32 %v1469_v9, %v1456_v39  ;;  %v3467_v24 = vor.u32 %v3954_v19, %v3464_v23  ;;  %v1726_v42 = vperm.slane %v1724_v13, 0  ;;  %v3639_v39 = vor.u32 %v3999_v6, %v3638_v4  ;;  %v3979_v19 = vld [vmem:[#allocation7 + $0x154] sm:$0xf0]  ;;  %v3980_v6 = vld [vmem:[#allocation7 + $0x164] sm:$0xf] }
 0x102   :  { %2232 = vmatpush.bf16.msra.mxu1 %v3507_v29  ;;  %v3559_v20 = vor.u32 %v3979_v19, %v3558_v30  ;;  %v3560_v30 = vld [vmem:[#allocation7 + $0x158] sm:$0xf0]  ;;  %v3994_v19 = vld [vmem:[#allocation7 + $0x1d4] sm:$0xf] }
 0x103   :  { %v1742_v49 = vunpack.c.l.bf16 %v1726_v42  ;;  %2203 = vmatpush.bf16.msra.mxu0 %v3639_v39  ;;  %v3568_v39 = vld [vmem:[#allocation7 + $0x168] sm:$0xf0] }
 0x105   :  { %2219 = vmatpush.bf16.msrb.mxu3 %v3435_v33  ;;  %v3392_v33 = vld [vmem:[#allocation7 + $0x8] sm:$0xf0] }
 0x106   :  { %2233 = vmatpush.bf16.msra.mxu1 %v3499_v36  ;;  %v1495_v8 = vpop.f32.mrf.mxu2  ;;  %v1509_v31 = vpop.f32.mrf.mxu0  ;;  %v3395_v36 = vor.u32 %v3936_v14, %v3392_v33  ;;  %v3542_v33 = vld [vmem:[#allocation7 + $0x130] sm:$0xf] }
 0x107   :  { %v1496_v12 = vadd.f32 %v1495_v8, %v1482_v2  ;;  %v1483_v29 = vpop.f32.mrf.mxu3  ;;  %v3630_v8 = vld [vmem:[#allocation7 + $0x1e0] sm:$0xf] }
 0x108   :  { %v1484_v35 = vadd.f32 %v1483_v29, %v1470_v15  ;;  %v3977_v15 = vld [vmem:[#allocation7 + $0x144] sm:$0xf0] }
 0x109   :  { %2220 = vmatpush.bf16.msrb.mxu3 %v3427_v45  ;;  %v1510_v18 = vadd.f32 %v1509_v31, %v1496_v12  ;;  %v1741_v45 = vunpack.c.l.bf16 %v1723_v38  ;;  %v3551_v25 = vor.u32 %v3977_v15, %v3550_v51  ;;  %v3993_v29 = vld [vmem:[#allocation7 + $0x1c4] sm:$0xf0]  ;;  %v3976_v15 = vld [vmem:[#allocation7 + $0x144] sm:$0xf] }
 0x10a   :  { %2234 = vmatpush.bf16.msra.mxu1 %v3491_v48  ;;  %v3973_v38 = vld [vmem:[#allocation7 + $0x124] sm:$0xf0] }
 0x10b   :  { %v1710_v59 = vpack.c.bf16 %v1510_v18, %v1412_v34  ;;  %v3606_v34 = vld [vmem:[#allocation7 + $0x1b0] sm:$0xf] }
 0x10d   :  { %2221 = vmatpush.bf16.msrb.mxu3 %v3419_v27  ;;  %v1733_v48 = vunpack.c.l.bf16 %v1710_v59  ;;  %v1734_v58 = vunpack.c.h.bf16 %v1710_v59  ;;  %v3989_v59 = vld [vmem:[#allocation7 + $0x1a4] sm:$0xf0] }
 0x10e   :  { %2235 = vmatpush.bf16.msra.mxu1 %v3483_v57  ;;  %v1497_v40 = vpop.f32.mrf.mxu2  ;;  %v1511_v47 = vpop.f32.mrf.mxu0 }
 0x10f   :  { %v1498_v43 = vadd.f32 %v1497_v40, %v1484_v35  ;;  %v1745_v53 = vadd.f32 %v1741_v45, %v1733_v48  ;;  %v1746_v54 = vadd.f32 %v1742_v49, %v1734_v58  ;;  %v3543_v35 = vor.u32 %v3975_v46, %v3542_v33  ;;  %v3598_v40 = vld [vmem:[#allocation7 + $0x1a0] sm:$0xf]  ;;  %v3590_v48 = vld [vmem:[#allocation7 + $0x190] sm:$0xf] }
 0x111   :  { %2222 = vmatpush.bf16.msrb.mxu3 %v3411_v41  ;;  %v1512_v50 = vadd.f32 %v1511_v47, %v1498_v43  ;;  %v1765_v61 = vmax.f32 %v1745_v53, 0.0  ;;  %v1766_v62 = vmax.f32 %v1746_v54, 0.0  ;;  %v3566_v41 = vld [vmem:[#allocation7 + $0x160] sm:$0xf]  ;;  %v3599_v43 = vor.u32 %v3989_v59, %v3598_v40  ;;  %v3971_v47 = vld [vmem:[#allocation7 + $0x114] sm:$0xf0] }
 0x112   :  { %2236 = vmatpush.bf16.msra.mxu1 %v3475_v11  ;;  %v3567_v9 = vor.u32 %v3981_v7, %v3566_v41  ;;  %v3631_v11 = vor.u32 %v3997_v10, %v3630_v8  ;;  %v3518_v54 = vld [vmem:[#allocation7 + $0x100] sm:$0xf]  ;;  %v3996_v41 = vld [vmem:[#allocation7 + $0x1e4] sm:$0xf]  ;;  %v3571_v7 = vor.u32 %v3980_v6, %v3568_v39  ;;  %v3632_v8 = vld [vmem:[#allocation7 + $0x1e8] sm:$0xf0] }
 0x113   :  { %v1712_v52 = vpack.c.bf16 %v1512_v50, %v1414_v44  ;;  %v3635_v10 = vor.u32 %v3996_v41, %v3632_v8  ;;  %v3972_v59 = vld [vmem:[#allocation7 + $0x124] sm:$0xf]  ;;  %v3520_v41 = vld [vmem:[#allocation7 + $0x108] sm:$0xf0] }
 0x114   :  { %2190 = vmatpush.bf16.msrb.mxu2 %v3567_v9  ;;  %2204 = vmatpush.bf16.msra.mxu0 %v3631_v11  ;;  %v3978_v11 = vld [vmem:[#allocation7 + $0x154] sm:$0xf]  ;;  %v3968_v39 = vld [vmem:[#allocation7 + $0x104] sm:$0xf] }
 0x115   :  { %2223 = vmatpush.bf16.msrb.mxu3 %v3403_v22  ;;  %v1737_v21 = vunpack.c.l.bf16 %v1712_v52  ;;  %v1738_v26 = vunpack.c.h.bf16 %v1712_v52  ;;  %v3995_v22 = vld [vmem:[#allocation7 + $0x1d4] sm:$0xf0]  ;;  %v1720_v8 = vld [vmem:[#allocation1 + $0x1b] sm:$0xff] }
 0x116   :  { %2237 = vmatpush.bf16.msra.mxu1 %v3467_v24  ;;  %v4354_v12 = vpop.f32.mrf.mxu1  ;;  %v3623_v23 = vor.u32 %v3995_v22, %v3622_v28  ;;  %v3614_v24 = vld [vmem:[#allocation7 + $0x1c0] sm:$0xf]  ;;  %v3987_v52 = vld [vmem:[#allocation7 + $0x194] sm:$0xf0]  ;;  %v3563_v28 = vor.u32 %v3978_v11, %v3560_v30 }
 0x117   :  { %v1749_v27 = vadd.f32 %v1741_v45, %v1737_v21  ;;  %v1750_v60 = vadd.f32 %v1742_v49, %v1738_v26  ;;  %v3615_v32 = vor.u32 %v3993_v29, %v3614_v24  ;;  %v3526_v45 = vld [vmem:[#allocation7 + $0x110] sm:$0xf]  ;;  %v3591_v53 = vor.u32 %v3987_v52, %v3590_v48  ;;  %v3969_v21 = vld [vmem:[#allocation7 + $0x104] sm:$0xf0]  ;;  %v3582_v26 = vld [vmem:[#allocation7 + $0x180] sm:$0xf] }
 0x118   :  { %2191 = vmatpush.bf16.msrb.mxu2 %v3559_v20  ;;  %2205 = vmatpush.bf16.msra.mxu0 %v3623_v23  ;;  %v3527_v50 = vor.u32 %v3971_v47, %v3526_v45  ;;  %v3624_v20 = vld [vmem:[#allocation7 + $0x1d8] sm:$0xf0]  ;;  %v3552_v24 = vld [vmem:[#allocation7 + $0x148] sm:$0xf0]  ;;  %v3988_v48 = vld [vmem:[#allocation7 + $0x1a4] sm:$0xf] }
 0x119   :  { %2224 = vmatpush.bf16.msrb.mxu3 %v3395_v36  ;;  %v1769_v57 = vmax.f32 %v1749_v27, 0.0  ;;  %v1770_v0 = vmax.f32 %v1750_v60, 0.0  ;;  %v3991_v36 = vld [vmem:[#allocation7 + $0x1b4] sm:$0xf0]  ;;  %v3519_v27 = vor.u32 %v3969_v21, %v3518_v54  ;;  %v3985_v60 = vld [vmem:[#allocation7 + $0x184] sm:$0xf0]  ;;  %v3627_v22 = vor.u32 %v3994_v19, %v3624_v20 }
 0x11a   :  { %2238 = vmatpush.bf16.msra.mxu1 %v3459_v16  ;;  %v4352_v56 = vpop.f32.mrf.mxu0  ;;  %v3607_v55 = vor.u32 %v3991_v36, %v3606_v34  ;;  %v3535_v16 = vor.u32 %v3973_v38, %v3534_v37  ;;  %v3555_v29 = vor.u32 %v3976_v15, %v3552_v24  ;;  %v3544_v37 = vld [vmem:[#allocation7 + $0x138] sm:$0xf0]  ;;  %v3990_v38 = vld [vmem:[#allocation7 + $0x1b4] sm:$0xf] }
 0x11b   :  { %v1773_v1 = vpack.c.bf16 %v1769_v57, %v1765_v61  ;;  %v1774_v2 = vpack.c.bf16 %v1770_v0, %v1766_v62  ;;  %v3982_v61 = vld [vmem:[#allocation7 + $0x174] sm:$0xf]  ;;  %v3583_v57 = vor.u32 %v3985_v60, %v3582_v26  ;;  %v3576_v0 = vld [vmem:[#allocation7 + $0x178] sm:$0xf0] }
 0x11c   :  { %2192 = vmatpush.bf16.msrb.mxu2 %v3551_v25  ;;  %2206 = vmatpush.bf16.msra.mxu0 %v3615_v32  ;;  %v3579_v63 = vor.u32 %v3982_v61, %v3576_v0  ;;  %v3992_v25 = vld [vmem:[#allocation7 + $0x1c4] sm:$0xf]  ;;  %v3616_v32 = vld [vmem:[#allocation7 + $0x1c8] sm:$0xf0]  ;;  %v3528_v60 = vld [vmem:[#allocation7 + $0x118] sm:$0xf0] }
 0x11d   :  { %2169 = vmatmul.bf16.vlgmr.msra.gmra.mxu3 %v1773_v1  ;;  %2183 = vmatmul.bf16.vlgmr.msrb.gmra.mxu1 %v1774_v2  ;;  %v3619_v46 = vor.u32 %v3992_v25, %v3616_v32  ;;  %v3592_v0 = vld [vmem:[#allocation7 + $0x198] sm:$0xf0] }
 0x11e   :  { %v4360_v18 = vpop.f32.mrf.mxu1 }
 0x11f   :  { %v4358_v31 = vpop.f32.mrf.mxu3 }
 0x120   :  { %2193 = vmatpush.bf16.msrb.mxu2 %v3543_v35  ;;  %2207 = vmatpush.bf16.msra.mxu0 %v3607_v55  ;;  %v1538_v34 = vadd.f32 %v4358_v31, %v4354_v12  ;;  %v3974_v55 = vld [vmem:[#allocation7 + $0x134] sm:$0xf] }
 0x121   :  { %v3547_v40 = vor.u32 %v3974_v55, %v3544_v37 }
 0x122   :  { %v4356_v17 = vpop.f32.mrf.mxu0  ;;  %v1552_v52 = vadd.f32 %v4352_v56, %v1538_v34 }
 0x124   :  { %2194 = vmatpush.bf16.msrb.mxu2 %v3535_v16  ;;  %2208 = vmatpush.bf16.msra.mxu0 %v3599_v43  ;;  %v3608_v16 = vld [vmem:[#allocation7 + $0x1b8] sm:$0xf0]  ;;  %v3536_v43 = vld [vmem:[#allocation7 + $0x128] sm:$0xf0] }
 0x125   :  { %v3611_v47 = vor.u32 %v3990_v38, %v3608_v16  ;;  %v3539_v21 = vor.u32 %v3972_v59, %v3536_v43 }
 0x126   :  { %v4362_v13 = vpop.f32.mrf.mxu2 }
 0x127   :  { %v4366_v42 = vpop.f32.mrf.mxu3 }
 0x128   :  { %2195 = vmatpush.bf16.msrb.mxu2 %v3527_v50  ;;  %2209 = vmatpush.bf16.msra.mxu0 %v3591_v53  ;;  %v3600_v50 = vld [vmem:[#allocation7 + $0x1a8] sm:$0xf0]  ;;  %v1540_v12 = vadd.f32 %v4366_v42, %v4360_v18 }
 0x129   :  { %v3603_v26 = vor.u32 %v3988_v48, %v3600_v50 }
 0x12a   :  { %v4364_v14 = vpop.f32.mrf.mxu0  ;;  %v1554_v56 = vadd.f32 %v4356_v17, %v1540_v12 }
 0x12c   :  { %2196 = vmatpush.bf16.msrb.mxu2 %v3519_v27  ;;  %2210 = vmatpush.bf16.msra.mxu0 %v3583_v57  ;;  %v3970_v27 = vld [vmem:[#allocation7 + $0x114] sm:$0xf] }
 0x12d   :  { %2225 = vmatmul.bf16.vlgmr.msrb.gmra.mxu3 %v1773_v1  ;;  %2239 = vmatmul.bf16.vlgmr.msra.gmra.mxu1 %v1774_v2  ;;  %v3998_v1 = vld [vmem:[#allocation7 + $0x1f4] sm:$0xf]  ;;  %v3640_v2 = vld [vmem:[#allocation7 + $0x1f8] sm:$0xf0]  ;;  %v3531_v18 = vor.u32 %v3970_v27, %v3528_v60  ;;  %v4014_v27 = vld [vmem:[%s4459_s5 + $0x70] sm:$0xff] }
 0x12e   :  { %v4370_v58 = vpop.f32.mrf.mxu2  ;;  %v3643_v3 = vor.u32 %v3998_v1, %v3640_v2  ;;  %v3986_v57 = vld [vmem:[#allocation7 + $0x194] sm:$0xf]  ;;  %v1566_v1 = vadd.f32 %v4362_v13, %v1552_v52 }
 0x12f   :  { %v3595_v6 = vor.u32 %v3986_v57, %v3592_v0  ;;  %v1568_v17 = vadd.f32 %v4370_v58, %v1554_v56  ;;  %v2275_v60 = vld [vmem:[%s4458_s4] sm:$0x3]  ;;  %v4013_v57 = vld [vmem:[%s4459_s5 + $0x68] sm:$0xff]  ;;  %v4003_v56 = vld [vmem:[%s4459_s5 + $0x18] sm:$0xff] }
 0x130   :  { %2245 = vmatpush.bf16.msra.mxu2 %v3579_v63  ;;  %2259 = vmatpush.bf16.msrb.mxu0 %v3643_v3  ;;  %v4004_v0 = vld [vmem:[%s4459_s5 + $0x20] sm:$0xff] }
 0x132   :  { %v4372_v49 = vpop.f32.mrf.mxu0 }
 0x134   :  { %2246 = vmatpush.bf16.msra.mxu2 %v3571_v7  ;;  %2260 = vmatpush.bf16.msrb.mxu0 %v3635_v10  ;;  %v3584_v10 = vld [vmem:[#allocation7 + $0x188] sm:$0xf0] }
 0x136   :  { %v4368_v44 = vpop.f32.mrf.mxu1 }
 0x137   :  { %v1580_v42 = vadd.f32 %v4368_v44, %v1566_v1  ;;  %v3523_v44 = vor.u32 %v3968_v39, %v3520_v41  ;;  %v4012_v1 = vld [vmem:[%s4459_s5 + $0x60] sm:$0xff]  ;;  %v4009_v39 = vld [vmem:[%s4459_s5 + $0x48] sm:$0xff] }
 0x138   :  { %2247 = vmatpush.bf16.msra.mxu2 %v3563_v28  ;;  %2261 = vmatpush.bf16.msrb.mxu0 %v3627_v22 }
 0x13c   :  { %2248 = vmatpush.bf16.msra.mxu2 %v3555_v29  ;;  %2262 = vmatpush.bf16.msrb.mxu0 %v3619_v46 }
 0x13e   :  { %v4376_v4 = vpop.f32.mrf.mxu1  ;;  %v1635_v9 = vpop.f32.mrf.mxu0 }
 0x13f   :  { %v4374_v62 = vpop.f32.mrf.mxu3  ;;  %v1582_v24 = vadd.f32 %v4376_v4, %v1568_v17 }
 0x140   :  { %2249 = vmatpush.bf16.msra.mxu2 %v3547_v40  ;;  %2263 = vmatpush.bf16.msrb.mxu0 %v3611_v47  ;;  %v1594_v13 = vadd.f32 %v4374_v62, %v1580_v42  ;;  %v4010_v42 = vld [vmem:[%s4459_s5 + $0x50] sm:$0xff] }
 0x142   :  { %v1608_v29 = vadd.f32 %v4364_v14, %v1594_v13 }
 0x144   :  { %2250 = vmatpush.bf16.msra.mxu2 %v3539_v21  ;;  %2264 = vmatpush.bf16.msrb.mxu0 %v3603_v26  ;;  %v4015_v21 = vld [vmem:[%s4459_s5 + $0x78] sm:$0xff]  ;;  %v4006_v26 = vld [vmem:[%s4459_s5 + $0x30] sm:$0xff] }
 0x145   :  { %2450 = vmatpush.bf16.msrb.mxu1 %v4015_v21 }
 0x146   :  { %v1621_v5 = vpop.f32.mrf.mxu2  ;;  %v1637_v36 = vpop.f32.mrf.mxu0 }
 0x147   :  { %v4378_v23 = vpop.f32.mrf.mxu3  ;;  %v1636_v35 = vadd.f32 %v1635_v9, %v1621_v5  ;;  %v1719_v5 = vld [vmem:[#allocation1 + $0x12] sm:$0xff] }
 0x148   :  { %v3984_v9 = vld [vmem:[#allocation7 + $0x184] sm:$0xf]  ;;  %v1727_v20 = vpack.i.b16 %v1719_v5, %v1719_v5  ;;  %2251 = vmatpush.bf16.msra.mxu2 %v3531_v18  ;;  %2265 = vmatpush.bf16.msrb.mxu0 %v3595_v6  ;;  %v1596_v62 = vadd.f32 %v4378_v23, %v1582_v24  ;;  %2277 = vst [vmem:[#allocation1] ss:$9 sm:$0xff] %v2275_v60  ;;  %v4001_v6 = vld [vmem:[%s4459_s5 + $0x8] sm:$0xff] }
 0x149   :  { %v3587_v15 = vor.u32 %v3984_v9, %v3584_v10  ;;  %2451 = vmatpush.bf16.msrb.mxu1 %v4014_v27  ;;  %v4002_v18 = vld [vmem:[%s4459_s5 + $0x10] sm:$0xff]  ;;  %v4000_v9 = vld [vmem:[%s4459_s5] sm:$0xff] }
 0x14a   :  { %v4008_v10 = vld [vmem:[%s4459_s5 + $0x40] sm:$0xff] }
 0x14c   :  { %2252 = vmatpush.bf16.msra.mxu2 %v3523_v44  ;;  %2266 = vmatpush.bf16.msrb.mxu0 %v3587_v15 }
 0x14d   :  { %2452 = vmatpush.bf16.msrb.mxu1 %v4013_v57  ;;  %v4022_v57 = vld [vmem:[#allocation8 + $0x30] sm:$0xff] }
 0x14e   :  { %v1623_v33 = vpop.f32.mrf.mxu2 }
 0x14f   :  { %v1638_v63 = vadd.f32 %v1637_v36, %v1623_v33  ;;  %v1729_v33 = vperm.slane %v1727_v20, 0  ;;  %v1610_v36 = vadd.f32 %v4372_v49, %v1596_v62  ;;  %v4007_v49 = vld [vmem:[%s4459_s5 + $0x38] sm:$0xff]  ;;  %v2278_v44 = vld [vmem:[#allocation1] sm:$0xff] }
 0x150   :  { %2436 = vmatpush.bf16.msra.mxu3 %v4007_v49 }
 0x151   :  { %v1743_v55 = vunpack.c.l.bf16 %v1729_v33  ;;  %2453 = vmatpush.bf16.msrb.mxu1 %v4012_v1  ;;  %v4020_v1 = vld [vmem:[#allocation8 + $0x20] sm:$0xff] }
 0x154   :  { %2437 = vmatpush.bf16.msra.mxu3 %v4006_v26 }
 0x156   :  { %v1649_v51 = vpop.f32.mrf.mxu1 }
 0x157   :  { %v1650_v45 = vadd.f32 %v1649_v51, %v1636_v35  ;;  %v1730_v51 = vpack.i.b16 %v1720_v8, %v1720_v8 }
 0x159   :  { %v1732_v46 = vperm.slane %v1730_v51, 0 }
 0x15b   :  { %v1744_v4 = vunpack.c.l.bf16 %v1732_v46 }
 0x15e   :  { %v1651_v54 = vpop.f32.mrf.mxu1  ;;  %v1691_v3 = vpop.f32.mrf.mxu0 }
 0x15f   :  { %v1663_v53 = vpop.f32.mrf.mxu3  ;;  %v1652_v7 = vadd.f32 %v1651_v54, %v1638_v63  ;;  %v4011_v63 = vld [vmem:[%s4459_s5 + $0x58] sm:$0xff] }
 0x160   :  { %v1664_v31 = vadd.f32 %v1663_v53, %v1650_v45  ;;  %2454 = vmatpush.bf16.msrb.mxu1 %v4011_v63  ;;  %v4017_v63 = vld [vmem:[#allocation8 + $0x8] sm:$0xff] }
 0x164   :  { %2455 = vmatpush.bf16.msrb.mxu1 %v4010_v42  ;;  %v2466_v42 = vld [vmem:[%s4460_s6] sm:$0x1] }
 0x166   :  { %v1677_v61 = vpop.f32.mrf.mxu2  ;;  %v1705_v28 = vpop.f32.mrf.mxu1 }
 0x167   :  { %v1678_v2 = vadd.f32 %v1677_v61, %v1664_v31  ;;  %v1665_v11 = vpop.f32.mrf.mxu3  ;;  %v1693_v34 = vpop.f32.mrf.mxu0  ;;  %v4005_v61 = vld [vmem:[%s4459_s5 + $0x28] sm:$0xff] }
 0x168   :  { %v1666_v19 = vadd.f32 %v1665_v11, %v1652_v7  ;;  %2438 = vmatpush.bf16.msra.mxu3 %v4005_v61  ;;  %2456 = vmatpush.bf16.msrb.mxu1 %v4009_v39  ;;  %v4023_v11 = vld [vmem:[#allocation8 + $0x38] sm:$0xff]  ;;  %v2468_v39 = vpack.i.b16 %v2466_v42, %v2466_v42 }
 0x169   :  { %v1692_v30 = vadd.f32 %v1691_v3, %v1678_v2 }
 0x16b   :  { %v1706_v22 = vadd.f32 %v1705_v28, %v1692_v30 }
 0x16c   :  { %2439 = vmatpush.bf16.msra.mxu3 %v4004_v0  ;;  %2457 = vmatpush.bf16.msrb.mxu1 %v4008_v10  ;;  %v4021_v0 = vld [vmem:[#allocation8 + $0x28] sm:$0xff] }
 0x16d   :  { %v1711_v58 = vpack.c.bf16 %v1706_v22, %v1608_v29  ;;  %v2279_v22 = vld [vmem:[#allocation1 + $0x9] sm:$0xff]  ;;  %v2280_v29 = vpack.i.b16 %v2278_v44, %v2278_v44 }
 0x16e   :  { %v1679_v25 = vpop.f32.mrf.mxu2  ;;  %v1707_v37 = vpop.f32.mrf.mxu1 }
 0x16f   :  { %v1680_v32 = vadd.f32 %v1679_v25, %v1666_v19  ;;  %v1735_v38 = vunpack.c.l.bf16 %v1711_v58  ;;  %v1736_v40 = vunpack.c.h.bf16 %v1711_v58 }
 0x170   :  { %2440 = vmatpush.bf16.msra.mxu3 %v4003_v56  ;;  %v4018_v56 = vld [vmem:[#allocation8 + $0x10] sm:$0xff] }
 0x171   :  { %v1694_v35 = vadd.f32 %v1693_v34, %v1680_v32  ;;  %v1747_v14 = vadd.f32 %v1743_v55, %v1735_v38  ;;  %v1748_v43 = vadd.f32 %v1744_v4, %v1736_v40  ;;  %v2283_v32 = vpack.i.b16 %v2279_v22, %v2279_v22 }
 0x173   :  { %v1708_v16 = vadd.f32 %v1707_v37, %v1694_v35  ;;  %v1767_v50 = vmax.f32 %v1747_v14, 0.0  ;;  %v1768_v52 = vmax.f32 %v1748_v43, 0.0  ;;  %v2282_v35 = vperm.slane %v2280_v29, 0 }
 0x174   :  { %2441 = vmatpush.bf16.msra.mxu3 %v4002_v18 }
 0x175   :  { %v1713_v59 = vpack.c.bf16 %v1708_v16, %v1610_v36  ;;  %v2285_v36 = vperm.slane %v2283_v32, 0  ;;  %v2290_v16 = vunpack.c.l.bf16 %v2282_v35 }
 0x177   :  { %v1739_v45 = vunpack.c.l.bf16 %v1713_v59  ;;  %v1740_v23 = vunpack.c.h.bf16 %v1713_v59  ;;  %v2291_v59 = vunpack.c.l.bf16 %v2285_v36 }
 0x178   :  { %2442 = vmatpush.bf16.msra.mxu3 %v4001_v6 }
 0x179   :  { %v1751_v47 = vadd.f32 %v1743_v55, %v1739_v45  ;;  %v1752_v48 = vadd.f32 %v1744_v4, %v1740_v23 }
 0x17b   :  { %v1771_v53 = vmax.f32 %v1751_v47, 0.0  ;;  %v1772_v12 = vmax.f32 %v1752_v48, 0.0 }
 0x17c   :  { %2443 = vmatpush.bf16.msra.mxu3 %v4000_v9 }
 0x17d   :  { %v1775_v31 = vpack.c.bf16 %v1771_v53, %v1767_v50  ;;  %v1776_v54 = vpack.c.bf16 %v1772_v12, %v1768_v52 }
 0x17f   :  { %2197 = vmatmul.bf16.vlgmr.msrb.gmra.mxu2 %v1775_v31  ;;  %2211 = vmatmul.bf16.vlgmr.msra.gmra.mxu0 %v1776_v54 }
 0x180   :  { %2547 = vmatpush.bf16.msrb.mxu2 %v4023_v11 }
 0x184   :  { %2548 = vmatpush.bf16.msrb.mxu2 %v4022_v57 }
 0x188   :  { %2549 = vmatpush.bf16.msrb.mxu2 %v4021_v0 }
 0x18c   :  { %2550 = vmatpush.bf16.msrb.mxu2 %v4020_v1 }
 0x18f   :  { %2253 = vmatmul.bf16.vlgmr.msra.gmra.mxu2 %v1775_v31  ;;  %2267 = vmatmul.bf16.vlgmr.msrb.gmra.mxu0 %v1776_v54 }
 0x19a   :  { %v2184_v3 = vpop.f32.mrf.mxu1 }
 0x1a0   :  { %v2170_v2 = vpop.f32.mrf.mxu3 }
 0x1a1   :  { %v2185_v28 = vadd.f32 %v2184_v3, %v2170_v2  ;;  %v4019_v2 = vld [vmem:[#allocation8 + $0x18] sm:$0xff]  ;;  %v4016_v3 = vld [vmem:[#allocation8] sm:$0xff] }
 0x1a2   :  { %v2186_v8 = vpop.f32.mrf.mxu1  ;;  %2551 = vmatpush.bf16.msrb.mxu2 %v4019_v2 }
 0x1a6   :  { %2552 = vmatpush.bf16.msrb.mxu2 %v4018_v56 }
 0x1a8   :  { %v2172_v41 = vpop.f32.mrf.mxu3 }
 0x1a9   :  { %v2187_v58 = vadd.f32 %v2186_v8, %v2172_v41 }
 0x1aa   :  { %v2240_v19 = vpop.f32.mrf.mxu1  ;;  %2553 = vmatpush.bf16.msrb.mxu2 %v4017_v63 }
 0x1ae   :  { %2554 = vmatpush.bf16.msrb.mxu2 %v4016_v3 }
 0x1b0   :  { %v2226_v17 = vpop.f32.mrf.mxu3 }
 0x1b1   :  { %v2241_v20 = vadd.f32 %v2240_v19, %v2226_v17 }
 0x1b2   :  { %v2242_v34 = vpop.f32.mrf.mxu1 }
 0x1b8   :  { %v2228_v33 = vpop.f32.mrf.mxu3 }
 0x1b9   :  { %v2243_v55 = vadd.f32 %v2242_v34, %v2228_v33 }
 0x1fc   :  { %v2212_v5 = vpop.f32.mrf.mxu0 }
 0x202   :  { %v2198_v7 = vpop.f32.mrf.mxu2 }
 0x203   :  { %v2199_v24 = vadd.f32 %v2198_v7, %v2185_v28  ;;  %v2470_v7 = vperm.slane %v2468_v39, 0 }
 0x204   :  { %v2214_v13 = vpop.f32.mrf.mxu0 }
 0x205   :  { %v2213_v46 = vadd.f32 %v2212_v5, %v2199_v24 }
 0x20a   :  { %v2200_v30 = vpop.f32.mrf.mxu2 }
 0x20b   :  { %v2201_v37 = vadd.f32 %v2200_v30, %v2187_v58 }
 0x20c   :  { %v2268_v51 = vpop.f32.mrf.mxu0 }
 0x20d   :  { %v2215_v43 = vadd.f32 %v2214_v13, %v2201_v37  ;;  %v2473_v13 = vunpack.c.l.bf16 %v2470_v7 }
 0x212   :  { %v2254_v15 = vpop.f32.mrf.mxu2 }
 0x213   :  { %v2255_v25 = vadd.f32 %v2254_v15, %v2241_v20 }
 0x214   :  { %v2270_v14 = vpop.f32.mrf.mxu0 }
 0x215   :  { %v2269_v62 = vadd.f32 %v2268_v51, %v2255_v25  ;;  %v2563_v51 = vld [vmem:[%s4462_s8] sm:$0x1] }
 0x216   :  { %v2565_v15 = vpack.i.b16 %v2563_v51, %v2563_v51 }
 0x217   :  { %v2273_v38 = vpack.c.bf16 %v2269_v62, %v2213_v46 }
 0x218   :  { %v2567_v24 = vperm.slane %v2565_v15, 0 }
 0x219   :  { %v2286_v45 = vunpack.c.l.bf16 %v2273_v38  ;;  %v2287_v23 = vunpack.c.h.bf16 %v2273_v38 }
 0x21a   :  { %v2256_v40 = vpop.f32.mrf.mxu2  ;;  %v2570_v32 = vunpack.c.l.bf16 %v2567_v24 }
 0x21b   :  { %v2257_v4 = vadd.f32 %v2256_v40, %v2243_v55  ;;  %v2292_v50 = vadd.f32 %v2290_v16, %v2286_v45  ;;  %v2293_v52 = vadd.f32 %v2291_v59, %v2287_v23 }
 0x21d   :  { %v2271_v47 = vadd.f32 %v2270_v14, %v2257_v4  ;;  %v2302_v49 = vmax.f32 %v2292_v50, 0.0  ;;  %v2303_v21 = vmax.f32 %v2293_v52, 0.0 }
 0x21f   :  { %v2274_v48 = vpack.c.bf16 %v2271_v47, %v2215_v43 }
 0x221   :  { %v2288_v53 = vunpack.c.l.bf16 %v2274_v48  ;;  %v2289_v12 = vunpack.c.h.bf16 %v2274_v48 }
 0x223   :  { %v2294_v31 = vadd.f32 %v2290_v16, %v2288_v53  ;;  %v2295_v54 = vadd.f32 %v2291_v59, %v2289_v12 }
 0x225   :  { %v2304_v26 = vmax.f32 %v2294_v31, 0.0  ;;  %v2305_v27 = vmax.f32 %v2295_v54, 0.0 }
 0x227   :  { %v2306_v60 = vpack.c.bf16 %v2304_v26, %v2302_v49  ;;  %v2307_v61 = vpack.c.bf16 %v2305_v27, %v2303_v21 }
 0x229   :  { %2444 = vmatmul.bf16.vlgmr.msra.gmra.mxu3 %v2306_v60  ;;  %2458 = vmatmul.bf16.vlgmr.msrb.gmra.mxu1 %v2307_v61 }
 0x2a6   :  { %v2459_v18 = vpop.f32.mrf.mxu1 }
 0x2ac   :  { %v2445_v5 = vpop.f32.mrf.mxu3 }
 0x2ad   :  { %v2460_v6 = vadd.f32 %v2459_v18, %v2445_v5 }
 0x2ae   :  { %v2461_v8 = vpop.f32.mrf.mxu1 }
 0x2af   :  { %v2464_v41 = vpack.c.bf16 %v2460_v6, %v2460_v6 }
 0x2b1   :  { %v2471_v10 = vunpack.c.l.bf16 %v2464_v41 }
 0x2b3   :  { %v2474_v17 = vadd.f32 %v2473_v13, %v2471_v10 }
 0x2b4   :  { %v2447_v9 = vpop.f32.mrf.mxu3 }
 0x2b5   :  { %v2462_v11 = vadd.f32 %v2461_v8, %v2447_v9  ;;  %v2480_v20 = vmax.f32 %v2474_v17, 0.0 }
 0x2b7   :  { %v2465_v30 = vpack.c.bf16 %v2462_v11, %v2462_v11 }
 0x2b9   :  { %v2472_v19 = vunpack.c.l.bf16 %v2465_v30 }
 0x2bb   :  { %v2475_v28 = vadd.f32 %v2473_v13, %v2472_v19 }
 0x2bd   :  { %v2481_v44 = vmax.f32 %v2475_v28, 0.0 }
 0x2bf   :  { %v2482_v22 = vpack.c.bf16 %v2481_v44, %v2480_v20 }
 0x2c1   :  { %2555 = vmatmul.bf16.vlgmr.msrb.gmra.mxu2 %v2482_v22 }
 0x344   :  { %v2556_v25 = vpop.f32.mrf.mxu2 }
 0x345   :  { %v2561_v29 = vpack.c.bf16 %v2556_v25, %v2556_v25 }
 0x347   :  { %v2568_v62 = vunpack.c.l.bf16 %v2561_v29 }
 0x349   :  { %v2571_v33 = vadd.f32 %v2570_v32, %v2568_v62 }
 0x34b   :  { %v2573_v58 = vpack.c.bf16 %v2571_v33, %v2571_v33 }
 0x34c   :  { %v2558_v46 = vpop.f32.mrf.mxu2 }
 0x34d   :  { %v2575_v34 = vunpack.c.l.bf16 %v2573_v58  ;;  %v2562_v35 = vpack.c.bf16 %v2558_v46, %v2558_v46 }
 0x34f   :  { %2577 = vst [vmem:[#allocation10] sm:$0xff] %v2575_v34  ;;  %v2569_v36 = vunpack.c.l.bf16 %v2562_v35 }
 0x351   :  { %v2572_v55 = vadd.f32 %v2570_v32, %v2569_v36 }
 0x353   :  { %v2574_v37 = vpack.c.bf16 %v2572_v55, %v2572_v55 }
 0x355   :  { %v2576_v38 = vunpack.c.l.bf16 %v2574_v37 }
 0x357   :  { %2578 = vst [vmem:[#allocation10 + $0x8] sm:$0xff] %v2576_v38 }
 0x358   :  { %2582 = vsyncadd [#allocation4], 224  ;;  %s2585_s3 = sshll.u32 %s4463_s9, 4  ;;  %s4175_s7 = smov [#allocation10]   ;;  %s2586_s3 = int_to_ptr.hbm [resolvable:$true] %s2585_s3 }
 0x359   :  { %s2583_s12 = sshll.u32 %s4175_s7, 4  ;;  %s4176_s13 = smov 32   ;;  %s2584_s12 = int_to_ptr.vmem [resolvable:$true] %s2583_s12 }
 0x35a   :  { %s4177_s14 = smov 2  }
 0x35b   :  { %2591 = dma.vmem_to_hbm [thread:$0]  %s2584_s12, 32, %s2586_s3, [#allocation4], %s4176_s13, %s4176_s13, %s4177_s14  }
 0x35c   :  { %4163 = dma.done.wait [#allocation4], 256  }
 0x35d   :  { %4164 = vsyncadd [#allocation4], 4294967040 }
 0x35e   :  { %2596 = vsyncpa [#allocation3], 1 }
 0x35f   :  { %2597 = vsyncpa [#allocation6], 1 }
 0x360   :  { %2598 = vsyncpa [#allocation9], 1 }
 0x361   :  { %2599 = vsyncpa [#allocation4], 1 }

</bundles_post_ra>
